<compile_context>
chip_gen: v7x
topology: tpu7x:2x2x1
jax: 0.10.0
libtpu: 0.0.40
codegen_flags: <defaults>
</compile_context>

<pallas_src>
import jax
import jax.numpy as jnp
import numpy as np
from jax.experimental import pallas as pl
from jax.experimental.pallas import tpu as pltpu

_BN_EPS = 1e-5


# ---------------------------------------------------------------------------
# Structured-matrix construction (tiny, built once per call from the weights).
# ---------------------------------------------------------------------------
def _build_conv_B(w_hwio, scale, W):
    """3x3 pad-1 conv: W-direction taps + channel contraction as banded mats.

    w_hwio: (3, 3, Cin, Cout).  Returns B: (3, W*Cin, W*Cout) with the folded
    BN per-channel scale absorbed.  Row kh of the conv is then
        out_2d += A[kh] @ in_2d @ B[kh]
    where A[kh] = eye(H, k=kh-1) handles the H shift / zero padding.
    """
    ks, _, Cin, Cout = w_hwio.shape
    col_scale = jnp.tile(scale.astype(jnp.float32), W)[None, :]      # (1, W*Cout)
    mats = []
    for kh in range(ks):
        B = jnp.zeros((W * Cin, W * Cout), jnp.float32)
        for kw in range(ks):
            E = jnp.eye(W, k=1 - kw, dtype=jnp.float32)              # w_in = w + kw - 1
            B = B + jnp.kron(E, w_hwio[kh, kw].astype(jnp.float32))
        mats.append(B * col_scale)
    return jnp.stack(mats)


def _build_deconv_mats(wt, Hs, Ws):
    """ConvTranspose2d(k=4, s=2, p=1) as   deco_2d = sum_k P[k] @ x_2d @ G[k].

    wt: (Cin, Cout, 4, 4) (PyTorch layout).  P[k]: (2Hs, Hs) places input row
    ih at output row oh = 2*ih - 1 + k; G[k]: (Ws*Cin, 2Ws*Cout) does the same
    placement in the W direction fused with the channel contraction.
    """
    Cin, Cout, K, _ = wt.shape
    H, W = 2 * Hs, 2 * Ws
    oh = jnp.arange(H)[:, None]
    ih = jnp.arange(Hs)[None, :]
    P = jnp.stack([(oh == 2 * ih - 1 + k).astype(jnp.float32) for k in range(K)])
    iw = jnp.arange(Ws)[:, None]
    ow = jnp.arange(W)[None, :]
    Gs = []
    for kh in range(K):
        G = jnp.zeros((Ws * Cin, W * Cout), jnp.float32)
        for kw in range(K):
            F = (ow == 2 * iw - 1 + kw).astype(jnp.float32)          # (Ws, W)
            G = G + jnp.kron(F, wt[:, :, kh, kw].astype(jnp.float32))
        Gs.append(G)
    return P, jnp.stack(Gs)


# ---------------------------------------------------------------------------
# The single fused kernel (one batch element per grid step).
# ---------------------------------------------------------------------------
def _fused_kernel(x_ref, ski_ref, P_ref, G_ref, tb_ref, A_ref,
                  B1d_ref, B1s_ref, b1_ref, B2_ref, b2_ref, B3_ref, b3_ref,
                  o_ref):
    f32 = jnp.float32
    x = x_ref[...]            # (Hs, Ws*Cx)
    ski = ski_ref[...]        # (H,  W*Cs)

    # --- Deco: ConvTranspose2d(k=4, s=2, p=1) + bias (no BN / ReLU) ---------
    deco = tb_ref[...]
    for k in range(P_ref.shape[0]):
        deco = deco + jnp.dot(
            P_ref[k], jnp.dot(x, G_ref[k], preferred_element_type=f32),
            preferred_element_type=f32)

    # --- De1: CBR_BB over cat(deco, ski); concat removed by weight split ----
    de1 = b1_ref[...]
    for k in range(A_ref.shape[0]):
        row = (jnp.dot(deco, B1d_ref[k], preferred_element_type=f32) +
               jnp.dot(ski, B1s_ref[k], preferred_element_type=f32))
        de1 = de1 + jnp.dot(A_ref[k], row, preferred_element_type=f32)
    de1 = jnp.maximum(de1, 0.0)

    # --- De2 = CBR_BB(CBR_BB(de1)) -------------------------------------------
    t = b2_ref[...]
    for k in range(A_ref.shape[0]):
        t = t + jnp.dot(A_ref[k],
                        jnp.dot(de1, B2_ref[k], preferred_element_type=f32),
                        preferred_element_type=f32)
    t = jnp.maximum(t, 0.0)

    de2 = b3_ref[...]
    for k in range(A_ref.shape[0]):
        de2 = de2 + jnp.dot(A_ref[k],
                            jnp.dot(t, B3_ref[k], preferred_element_type=f32),
                            preferred_element_type=f32)
    de2 = jnp.maximum(de2, 0.0)

    # Residual add; lane-dense (H, W*Cout) store.
    o_ref[...] = de2 + de1


# ---------------------------------------------------------------------------
# Parameters (BN folded as inference-mode affine with default init stats).
# ---------------------------------------------------------------------------
def init_params(key, in_ch, out_ch):
    # BN: gamma=1, beta=0, running_mean=0, running_var=1 ->
    #   scale = 1/sqrt(var+eps), bias = conv_bias * scale.
    # TODO(synk): training-mode BatchNorm (batch statistics) is not implemented.
    keys = jax.random.split(key, 8)
    bn_scale = 1.0 / np.sqrt(1.0 + _BN_EPS)

    def cbr(kw_key, kb_key, cin):
        w = jax.random.normal(kw_key, (3, 3, cin, out_ch), jnp.float32) * 0.1
        b = jax.random.normal(kb_key, (out_ch,), jnp.float32) * 0.05
        scale = jnp.full((out_ch,), bn_scale, jnp.float32)
        return (w, scale, b * scale)

    return {
        # ConvTranspose2d(in_ch, out_ch, 4, 2, 1): weight (Cin, Cout, 4, 4), bias (Cout,)
        'deco': (jax.random.normal(keys[0], (in_ch, out_ch, 4, 4), jnp.float32) * 0.1,
                 jax.random.normal(keys[1], (out_ch,), jnp.float32) * 0.05),
        'de1':  cbr(keys[2], keys[3], in_ch),
        'de2a': cbr(keys[4], keys[5], out_ch),
        'de2b': cbr(keys[6], keys[7], out_ch),
    }


# ---------------------------------------------------------------------------
# Forward wrapper (NCHW in / NCHW out to match the PyTorch module).
# ---------------------------------------------------------------------------
def cbr_res_up_forward(params, x_nchw, ski_nchw):
    N, Cx, Hs, Ws = x_nchw.shape
    _, Cs, H, W = ski_nchw.shape
    wt, tbias = params['deco']
    w1, s1, b1 = params['de1']
    w2, s2, b2 = params['de2a']
    w3, s3, b3 = params['de2b']
    Cout = wt.shape[1]
    assert H == 2 * Hs and W == 2 * Ws and w1.shape[2] == Cout + Cs

    # NCHW -> fused-lane 2-D layout (N, H, W*C): channels ride the lane dim.
    x2d = jnp.transpose(x_nchw, (0, 2, 3, 1)).reshape(N, Hs, Ws * Cx).astype(jnp.float32)
    ski2d = jnp.transpose(ski_nchw, (0, 2, 3, 1)).reshape(N, H, W * Cs).astype(jnp.float32)

    # Structured weight matrices: spatial taps, zero padding, stride-2
    # upsampling, channel-concat split and BN fold are all baked in here.
    P, G = _build_deconv_mats(wt, Hs, Ws)                 # (4,H,Hs), (4,Ws*Cx,W*Cout)
    A = jnp.stack([jnp.eye(H, k=kh - 1, dtype=jnp.float32) for kh in range(3)])
    B1d = _build_conv_B(w1[:, :, :Cout, :], s1, W)        # deco channels of the concat
    B1s = _build_conv_B(w1[:, :, Cout:, :], s1, W)        # ski  channels of the concat
    B2 = _build_conv_B(w2, s2, W)
    B3 = _build_conv_B(w3, s3, W)
    tb_col = jnp.tile(tbias.astype(jnp.float32), W)[None, :]
    b1_col = jnp.tile(b1.astype(jnp.float32), W)[None, :]
    b2_col = jnp.tile(b2.astype(jnp.float32), W)[None, :]
    b3_col = jnp.tile(b3.astype(jnp.float32), W)[None, :]

    def full(arr):
        nd = arr.ndim
        return pl.BlockSpec(arr.shape, lambda n: (0,) * nd)

    out2d = pl.pallas_call(
        _fused_kernel,
        out_shape=jax.ShapeDtypeStruct((N, H, W * Cout), jnp.float32),
        grid=(N,),
        in_specs=[
            pl.BlockSpec((pl.Squeezed(), Hs, Ws * Cx), lambda n: (n, 0, 0)),
            pl.BlockSpec((pl.Squeezed(), H, W * Cs), lambda n: (n, 0, 0)),
            full(P), full(G), full(tb_col), full(A),
            full(B1d), full(B1s), full(b1_col),
            full(B2), full(b2_col), full(B3), full(b3_col),
        ],
        out_specs=pl.BlockSpec((pl.Squeezed(), H, W * Cout), lambda n: (n, 0, 0)),
        compiler_params=pltpu.CompilerParams(dimension_semantics=("parallel",)),
    )(x2d, ski2d, P, G, tb_col, A, B1d, B1s, b1_col, B2, b2_col, B3, b3_col)

    out = out2d.reshape(N, H, W, Cout)
    return jnp.transpose(out, (0, 3, 1, 2))               # NHWC -> NCHW


# ---------------------------------------------------------------------------
# Pure-JAX reference.
# ---------------------------------------------------------------------------
def _conv_ref(x, w, scale, bias, pad):
    y = jax.lax.conv_general_dilated(
        x, w, (1, 1), [(pad, pad), (pad, pad)],
        dimension_numbers=('NHWC', 'HWIO', 'NHWC'),
        precision=jax.lax.Precision.HIGHEST)
    return jnp.maximum(y * scale + bias, 0.0)


def _deconv_ref(x, wt, bias):
    # ConvTranspose2d(k, s=2, p=1) == conv over the 2x lhs-dilated input with
    # the spatially flipped kernel and padding k-1-p on each side.
    K = wt.shape[2]
    wf = jnp.transpose(jnp.flip(wt, axis=(2, 3)), (2, 3, 0, 1))   # -> HWIO
    y = jax.lax.conv_general_dilated(
        x, wf, (1, 1), [(K - 2, K - 2), (K - 2, K - 2)],
        lhs_dilation=(2, 2),
        dimension_numbers=('NHWC', 'HWIO', 'NHWC'),
        precision=jax.lax.Precision.HIGHEST)
    return y + bias


def cbr_res_up_ref(params, x_nchw, ski_nchw):
    x = jnp.transpose(x_nchw, (0, 2, 3, 1)).astype(jnp.float32)
    ski = jnp.transpose(ski_nchw, (0, 2, 3, 1)).astype(jnp.float32)
    wt, tb = params['deco']
    deco = _deconv_ref(x, wt, tb)
    cat = jnp.concatenate([deco, ski], axis=-1)
    w, s, b = params['de1'];  de1 = _conv_ref(cat, w, s, b, 1)
    w, s, b = params['de2a']; t = _conv_ref(de1, w, s, b, 1)
    w, s, b = params['de2b']; de2 = _conv_ref(t, w, s, b, 1)
    return jnp.transpose(de2 + de1, (0, 3, 1, 2))


if __name__ == "__main__":
    key = jax.random.PRNGKey(0)
    k_x, k_s, k_p = jax.random.split(key, 3)

    N, in_ch, out_ch = 2, 8, 4
    Hs = Ws = 8
    H, W = 2 * Hs, 2 * Ws
    ski_ch = in_ch - out_ch                       # De1 expects in_ch = out_ch + ski_ch

    x = jax.random.normal(k_x, (N, in_ch, Hs, Ws), jnp.float32)     # NCHW like PyTorch
    ski = jax.random.normal(k_s, (N, ski_ch, H, W), jnp.float32)
    params = init_params(k_p, in_ch, out_ch)

    out = cbr_res_up_forward(params, x, ski)
    jax.block_until_ready(out)

    ref = cbr_res_up_ref(params, x, ski)
    np.testing.assert_allclose(np.asarray(out), np.asarray(ref), rtol=1e-2, atol=1e-2)
    assert out.shape == (N, out_ch, H, W)

    print("KERNEL_OK")
</pallas_src>

<mosaic_0001>
module attributes {stable_mosaic.version = 11 : i64} {
  func.func @_fused_kernel(%arg0: i32, %arg1: memref<1x8x64xf32, #tpu.memory_space<vmem>>, %arg2: memref<1x16x64xf32, #tpu.memory_space<vmem>>, %arg3: memref<4x16x8xf32, #tpu.memory_space<vmem>>, %arg4: memref<4x64x64xf32, #tpu.memory_space<vmem>>, %arg5: memref<1x64xf32, #tpu.memory_space<vmem>>, %arg6: memref<3x16x16xf32, #tpu.memory_space<vmem>>, %arg7: memref<3x64x64xf32, #tpu.memory_space<vmem>>, %arg8: memref<3x64x64xf32, #tpu.memory_space<vmem>>, %arg9: memref<1x64xf32, #tpu.memory_space<vmem>>, %arg10: memref<3x64x64xf32, #tpu.memory_space<vmem>>, %arg11: memref<1x64xf32, #tpu.memory_space<vmem>>, %arg12: memref<3x64x64xf32, #tpu.memory_space<vmem>>, %arg13: memref<1x64xf32, #tpu.memory_space<vmem>>, %arg14: memref<1x16x64xf32, #tpu.memory_space<vmem>>) attributes {dimension_semantics = [#tpu.dimension_semantics<parallel>], iteration_bounds = array<i64: 2>, scalar_prefetch = 0 : i64, scratch_operands = 0 : i64, tpu.core_type = #tpu.core_type<tc>, window_params = [{transform_indices = @transform_0, window_bounds = array<i64: 1, 8, 64>}, {transform_indices = @transform_1, window_bounds = array<i64: 1, 16, 64>}, {pipeline_mode = #tpu.pipeline_mode<synchronous>, transform_indices = @transform_2, window_bounds = array<i64: 4, 16, 8>}, {pipeline_mode = #tpu.pipeline_mode<synchronous>, transform_indices = @transform_3, window_bounds = array<i64: 4, 64, 64>}, {pipeline_mode = #tpu.pipeline_mode<synchronous>, transform_indices = @transform_4, window_bounds = array<i64: 1, 64>}, {pipeline_mode = #tpu.pipeline_mode<synchronous>, transform_indices = @transform_5, window_bounds = array<i64: 3, 16, 16>}, {pipeline_mode = #tpu.pipeline_mode<synchronous>, transform_indices = @transform_6, window_bounds = array<i64: 3, 64, 64>}, {pipeline_mode = #tpu.pipeline_mode<synchronous>, transform_indices = @transform_7, window_bounds = array<i64: 3, 64, 64>}, {pipeline_mode = #tpu.pipeline_mode<synchronous>, transform_indices = @transform_8, window_bounds = array<i64: 1, 64>}, {pipeline_mode = #tpu.pipeline_mode<synchronous>, transform_indices = @transform_9, window_bounds = array<i64: 3, 64, 64>}, {pipeline_mode = #tpu.pipeline_mode<synchronous>, transform_indices = @transform_10, window_bounds = array<i64: 1, 64>}, {pipeline_mode = #tpu.pipeline_mode<synchronous>, transform_indices = @transform_11, window_bounds = array<i64: 3, 64, 64>}, {pipeline_mode = #tpu.pipeline_mode<synchronous>, transform_indices = @transform_12, window_bounds = array<i64: 1, 64>}, {transform_indices = @transform_13, window_bounds = array<i64: 1, 16, 64>}]} {
    %c0 = arith.constant 0 : index
    %c0_0 = arith.constant 0 : index
    %c0_1 = arith.constant 0 : index
    %0 = vector.load %arg1[%c0, %c0_0, %c0_1] : memref<1x8x64xf32, #tpu.memory_space<vmem>>, vector<1x8x64xf32>
    %1 = vector.shape_cast %0 : vector<1x8x64xf32> to vector<8x64xf32>
    %c0_2 = arith.constant 0 : index
    %c0_3 = arith.constant 0 : index
    %c0_4 = arith.constant 0 : index
    %2 = vector.load %arg2[%c0_2, %c0_3, %c0_4] : memref<1x16x64xf32, #tpu.memory_space<vmem>>, vector<1x16x64xf32>
    %3 = vector.shape_cast %2 : vector<1x16x64xf32> to vector<16x64xf32>
    %c0_5 = arith.constant 0 : index
    %c0_6 = arith.constant 0 : index
    %4 = vector.load %arg5[%c0_5, %c0_6] : memref<1x64xf32, #tpu.memory_space<vmem>>, vector<1x64xf32>
    %c0_7 = arith.constant 0 : index
    %c0_8 = arith.constant 0 : index
    %c0_9 = arith.constant 0 : index
    %5 = vector.load %arg3[%c0_7, %c0_8, %c0_9] : memref<4x16x8xf32, #tpu.memory_space<vmem>>, vector<1x16x8xf32>
    %6 = vector.shape_cast %5 : vector<1x16x8xf32> to vector<16x8xf32>
    %c0_10 = arith.constant 0 : index
    %c0_11 = arith.constant 0 : index
    %c0_12 = arith.constant 0 : index
    %7 = vector.load %arg4[%c0_10, %c0_11, %c0_12] : memref<4x64x64xf32, #tpu.memory_space<vmem>>, vector<1x64x64xf32>
    %8 = vector.shape_cast %7 : vector<1x64x64xf32> to vector<64x64xf32>
    %cst = arith.constant dense<0.000000e+00> : vector<8x64xf32>
    %9 = tpu.matmul %1, %8, %cst {dimension_numbers = #tpu.dot_dimension_numbers<[1], [0], [0], [1], [0, 0, 1, 1], [], []>} : vector<8x64xf32>, vector<64x64xf32>, vector<8x64xf32> -> vector<8x64xf32>
    %cst_13 = arith.constant dense<0.000000e+00> : vector<16x64xf32>
    %10 = tpu.matmul %6, %9, %cst_13 {dimension_numbers = #tpu.dot_dimension_numbers<[1], [0], [0], [1], [0, 0, 1, 1], [], []>} : vector<16x8xf32>, vector<8x64xf32>, vector<16x64xf32> -> vector<16x64xf32>
    %11 = vector.broadcast %4 : vector<1x64xf32> to vector<16x64xf32>
    %12 = arith.addf %11, %10 : vector<16x64xf32>
    %c1 = arith.constant 1 : index
    %c0_14 = arith.constant 0 : index
    %c0_15 = arith.constant 0 : index
    %13 = vector.load %arg3[%c1, %c0_14, %c0_15] : memref<4x16x8xf32, #tpu.memory_space<vmem>>, vector<1x16x8xf32>
    %14 = vector.shape_cast %13 : vector<1x16x8xf32> to vector<16x8xf32>
    %c1_16 = arith.constant 1 : index
    %c0_17 = arith.constant 0 : index
    %c0_18 = arith.constant 0 : index
    %15 = vector.load %arg4[%c1_16, %c0_17, %c0_18] : memref<4x64x64xf32, #tpu.memory_space<vmem>>, vector<1x64x64xf32>
    %16 = vector.shape_cast %15 : vector<1x64x64xf32> to vector<64x64xf32>
    %cst_19 = arith.constant dense<0.000000e+00> : vector<8x64xf32>
    %17 = tpu.matmul %1, %16, %cst_19 {dimension_numbers = #tpu.dot_dimension_numbers<[1], [0], [0], [1], [0, 0, 1, 1], [], []>} : vector<8x64xf32>, vector<64x64xf32>, vector<8x64xf32> -> vector<8x64xf32>
    %cst_20 = arith.constant dense<0.000000e+00> : vector<16x64xf32>
    %18 = tpu.matmul %14, %17, %cst_20 {dimension_numbers = #tpu.dot_dimension_numbers<[1], [0], [0], [1], [0, 0, 1, 1], [], []>} : vector<16x8xf32>, vector<8x64xf32>, vector<16x64xf32> -> vector<16x64xf32>
    %19 = arith.addf %12, %18 : vector<16x64xf32>
    %c2 = arith.constant 2 : index
    %c0_21 = arith.constant 0 : index
    %c0_22 = arith.constant 0 : index
    %20 = vector.load %arg3[%c2, %c0_21, %c0_22] : memref<4x16x8xf32, #tpu.memory_space<vmem>>, vector<1x16x8xf32>
    %21 = vector.shape_cast %20 : vector<1x16x8xf32> to vector<16x8xf32>
    %c2_23 = arith.constant 2 : index
    %c0_24 = arith.constant 0 : index
    %c0_25 = arith.constant 0 : index
    %22 = vector.load %arg4[%c2_23, %c0_24, %c0_25] : memref<4x64x64xf32, #tpu.memory_space<vmem>>, vector<1x64x64xf32>
    %23 = vector.shape_cast %22 : vector<1x64x64xf32> to vector<64x64xf32>
    %cst_26 = arith.constant dense<0.000000e+00> : vector<8x64xf32>
    %24 = tpu.matmul %1, %23, %cst_26 {dimension_numbers = #tpu.dot_dimension_numbers<[1], [0], [0], [1], [0, 0, 1, 1], [], []>} : vector<8x64xf32>, vector<64x64xf32>, vector<8x64xf32> -> vector<8x64xf32>
    %cst_27 = arith.constant dense<0.000000e+00> : vector<16x64xf32>
    %25 = tpu.matmul %21, %24, %cst_27 {dimension_numbers = #tpu.dot_dimension_numbers<[1], [0], [0], [1], [0, 0, 1, 1], [], []>} : vector<16x8xf32>, vector<8x64xf32>, vector<16x64xf32> -> vector<16x64xf32>
    %26 = arith.addf %19, %25 : vector<16x64xf32>
    %c3 = arith.constant 3 : index
    %c0_28 = arith.constant 0 : index
    %c0_29 = arith.constant 0 : index
    %27 = vector.load %arg3[%c3, %c0_28, %c0_29] : memref<4x16x8xf32, #tpu.memory_space<vmem>>, vector<1x16x8xf32>
    %28 = vector.shape_cast %27 : vector<1x16x8xf32> to vector<16x8xf32>
    %c3_30 = arith.constant 3 : index
    %c0_31 = arith.constant 0 : index
    %c0_32 = arith.constant 0 : index
    %29 = vector.load %arg4[%c3_30, %c0_31, %c0_32] : memref<4x64x64xf32, #tpu.memory_space<vmem>>, vector<1x64x64xf32>
    %30 = vector.shape_cast %29 : vector<1x64x64xf32> to vector<64x64xf32>
    %cst_33 = arith.constant dense<0.000000e+00> : vector<8x64xf32>
    %31 = tpu.matmul %1, %30, %cst_33 {dimension_numbers = #tpu.dot_dimension_numbers<[1], [0], [0], [1], [0, 0, 1, 1], [], []>} : vector<8x64xf32>, vector<64x64xf32>, vector<8x64xf32> -> vector<8x64xf32>
    %cst_34 = arith.constant dense<0.000000e+00> : vector<16x64xf32>
    %32 = tpu.matmul %28, %31, %cst_34 {dimension_numbers = #tpu.dot_dimension_numbers<[1], [0], [0], [1], [0, 0, 1, 1], [], []>} : vector<16x8xf32>, vector<8x64xf32>, vector<16x64xf32> -> vector<16x64xf32>
    %33 = arith.addf %26, %32 : vector<16x64xf32>
    %c0_35 = arith.constant 0 : index
    %c0_36 = arith.constant 0 : index
    %34 = vector.load %arg9[%c0_35, %c0_36] : memref<1x64xf32, #tpu.memory_space<vmem>>, vector<1x64xf32>
    %c0_37 = arith.constant 0 : index
    %c0_38 = arith.constant 0 : index
    %c0_39 = arith.constant 0 : index
    %35 = vector.load %arg7[%c0_37, %c0_38, %c0_39] : memref<3x64x64xf32, #tpu.memory_space<vmem>>, vector<1x64x64xf32>
    %36 = vector.shape_cast %35 : vector<1x64x64xf32> to vector<64x64xf32>
    %cst_40 = arith.constant dense<0.000000e+00> : vector<16x64xf32>
    %37 = tpu.matmul %33, %36, %cst_40 {dimension_numbers = #tpu.dot_dimension_numbers<[1], [0], [0], [1], [0, 0, 1, 1], [], []>} : vector<16x64xf32>, vector<64x64xf32>, vector<16x64xf32> -> vector<16x64xf32>
    %c0_41 = arith.constant 0 : index
    %c0_42 = arith.constant 0 : index
    %c0_43 = arith.constant 0 : index
    %38 = vector.load %arg8[%c0_41, %c0_42, %c0_43] : memref<3x64x64xf32, #tpu.memory_space<vmem>>, vector<1x64x64xf32>
    %39 = vector.shape_cast %38 : vector<1x64x64xf32> to vector<64x64xf32>
    %cst_44 = arith.constant dense<0.000000e+00> : vector<16x64xf32>
    %40 = tpu.matmul %3, %39, %cst_44 {dimension_numbers = #tpu.dot_dimension_numbers<[1], [0], [0], [1], [0, 0, 1, 1], [], []>} : vector<16x64xf32>, vector<64x64xf32>, vector<16x64xf32> -> vector<16x64xf32>
    %41 = arith.addf %37, %40 : vector<16x64xf32>
    %c0_45 = arith.constant 0 : index
    %c0_46 = arith.constant 0 : index
    %c0_47 = arith.constant 0 : index
    %42 = vector.load %arg6[%c0_45, %c0_46, %c0_47] : memref<3x16x16xf32, #tpu.memory_space<vmem>>, vector<1x16x16xf32>
    %43 = vector.shape_cast %42 : vector<1x16x16xf32> to vector<16x16xf32>
    %cst_48 = arith.constant dense<0.000000e+00> : vector<16x64xf32>
    %44 = tpu.matmul %43, %41, %cst_48 {dimension_numbers = #tpu.dot_dimension_numbers<[1], [0], [0], [1], [0, 0, 1, 1], [], []>} : vector<16x16xf32>, vector<16x64xf32>, vector<16x64xf32> -> vector<16x64xf32>
    %45 = vector.broadcast %34 : vector<1x64xf32> to vector<16x64xf32>
    %46 = arith.addf %45, %44 : vector<16x64xf32>
    %c1_49 = arith.constant 1 : index
    %c0_50 = arith.constant 0 : index
    %c0_51 = arith.constant 0 : index
    %47 = vector.load %arg7[%c1_49, %c0_50, %c0_51] : memref<3x64x64xf32, #tpu.memory_space<vmem>>, vector<1x64x64xf32>
    %48 = vector.shape_cast %47 : vector<1x64x64xf32> to vector<64x64xf32>
    %cst_52 = arith.constant dense<0.000000e+00> : vector<16x64xf32>
    %49 = tpu.matmul %33, %48, %cst_52 {dimension_numbers = #tpu.dot_dimension_numbers<[1], [0], [0], [1], [0, 0, 1, 1], [], []>} : vector<16x64xf32>, vector<64x64xf32>, vector<16x64xf32> -> vector<16x64xf32>
    %c1_53 = arith.constant 1 : index
    %c0_54 = arith.constant 0 : index
    %c0_55 = arith.constant 0 : index
    %50 = vector.load %arg8[%c1_53, %c0_54, %c0_55] : memref<3x64x64xf32, #tpu.memory_space<vmem>>, vector<1x64x64xf32>
    %51 = vector.shape_cast %50 : vector<1x64x64xf32> to vector<64x64xf32>
    %cst_56 = arith.constant dense<0.000000e+00> : vector<16x64xf32>
    %52 = tpu.matmul %3, %51, %cst_56 {dimension_numbers = #tpu.dot_dimension_numbers<[1], [0], [0], [1], [0, 0, 1, 1], [], []>} : vector<16x64xf32>, vector<64x64xf32>, vector<16x64xf32> -> vector<16x64xf32>
    %53 = arith.addf %49, %52 : vector<16x64xf32>
    %c1_57 = arith.constant 1 : index
    %c0_58 = arith.constant 0 : index
    %c0_59 = arith.constant 0 : index
    %54 = vector.load %arg6[%c1_57, %c0_58, %c0_59] : memref<3x16x16xf32, #tpu.memory_space<vmem>>, vector<1x16x16xf32>
    %55 = vector.shape_cast %54 : vector<1x16x16xf32> to vector<16x16xf32>
    %cst_60 = arith.constant dense<0.000000e+00> : vector<16x64xf32>
    %56 = tpu.matmul %55, %53, %cst_60 {dimension_numbers = #tpu.dot_dimension_numbers<[1], [0], [0], [1], [0, 0, 1, 1], [], []>} : vector<16x16xf32>, vector<16x64xf32>, vector<16x64xf32> -> vector<16x64xf32>
    %57 = arith.addf %46, %56 : vector<16x64xf32>
    %c2_61 = arith.constant 2 : index
    %c0_62 = arith.constant 0 : index
    %c0_63 = arith.constant 0 : index
    %58 = vector.load %arg7[%c2_61, %c0_62, %c0_63] : memref<3x64x64xf32, #tpu.memory_space<vmem>>, vector<1x64x64xf32>
    %59 = vector.shape_cast %58 : vector<1x64x64xf32> to vector<64x64xf32>
    %cst_64 = arith.constant dense<0.000000e+00> : vector<16x64xf32>
    %60 = tpu.matmul %33, %59, %cst_64 {dimension_numbers = #tpu.dot_dimension_numbers<[1], [0], [0], [1], [0, 0, 1, 1], [], []>} : vector<16x64xf32>, vector<64x64xf32>, vector<16x64xf32> -> vector<16x64xf32>
    %c2_65 = arith.constant 2 : index
    %c0_66 = arith.constant 0 : index
    %c0_67 = arith.constant 0 : index
    %61 = vector.load %arg8[%c2_65, %c0_66, %c0_67] : memref<3x64x64xf32, #tpu.memory_space<vmem>>, vector<1x64x64xf32>
    %62 = vector.shape_cast %61 : vector<1x64x64xf32> to vector<64x64xf32>
    %cst_68 = arith.constant dense<0.000000e+00> : vector<16x64xf32>
    %63 = tpu.matmul %3, %62, %cst_68 {dimension_numbers = #tpu.dot_dimension_numbers<[1], [0], [0], [1], [0, 0, 1, 1], [], []>} : vector<16x64xf32>, vector<64x64xf32>, vector<16x64xf32> -> vector<16x64xf32>
    %64 = arith.addf %60, %63 : vector<16x64xf32>
    %c2_69 = arith.constant 2 : index
    %c0_70 = arith.constant 0 : index
    %c0_71 = arith.constant 0 : index
    %65 = vector.load %arg6[%c2_69, %c0_70, %c0_71] : memref<3x16x16xf32, #tpu.memory_space<vmem>>, vector<1x16x16xf32>
    %66 = vector.shape_cast %65 : vector<1x16x16xf32> to vector<16x16xf32>
    %cst_72 = arith.constant dense<0.000000e+00> : vector<16x64xf32>
    %67 = tpu.matmul %66, %64, %cst_72 {dimension_numbers = #tpu.dot_dimension_numbers<[1], [0], [0], [1], [0, 0, 1, 1], [], []>} : vector<16x16xf32>, vector<16x64xf32>, vector<16x64xf32> -> vector<16x64xf32>
    %68 = arith.addf %57, %67 : vector<16x64xf32>
    %cst_73 = arith.constant 0.000000e+00 : f32
    %69 = vector.broadcast %cst_73 : f32 to vector<16x64xf32>
    %70 = arith.maximumf %68, %69 : vector<16x64xf32>
    %c0_74 = arith.constant 0 : index
    %c0_75 = arith.constant 0 : index
    %71 = vector.load %arg11[%c0_74, %c0_75] : memref<1x64xf32, #tpu.memory_space<vmem>>, vector<1x64xf32>
    %c0_76 = arith.constant 0 : index
    %c0_77 = arith.constant 0 : index
    %c0_78 = arith.constant 0 : index
    %72 = vector.load %arg6[%c0_76, %c0_77, %c0_78] : memref<3x16x16xf32, #tpu.memory_space<vmem>>, vector<1x16x16xf32>
    %73 = vector.shape_cast %72 : vector<1x16x16xf32> to vector<16x16xf32>
    %c0_79 = arith.constant 0 : index
    %c0_80 = arith.constant 0 : index
    %c0_81 = arith.constant 0 : index
    %74 = vector.load %arg10[%c0_79, %c0_80, %c0_81] : memref<3x64x64xf32, #tpu.memory_space<vmem>>, vector<1x64x64xf32>
    %75 = vector.shape_cast %74 : vector<1x64x64xf32> to vector<64x64xf32>
    %cst_82 = arith.constant dense<0.000000e+00> : vector<16x64xf32>
    %76 = tpu.matmul %70, %75, %cst_82 {dimension_numbers = #tpu.dot_dimension_numbers<[1], [0], [0], [1], [0, 0, 1, 1], [], []>} : vector<16x64xf32>, vector<64x64xf32>, vector<16x64xf32> -> vector<16x64xf32>
    %cst_83 = arith.constant dense<0.000000e+00> : vector<16x64xf32>
    %77 = tpu.matmul %73, %76, %cst_83 {dimension_numbers = #tpu.dot_dimension_numbers<[1], [0], [0], [1], [0, 0, 1, 1], [], []>} : vector<16x16xf32>, vector<16x64xf32>, vector<16x64xf32> -> vector<16x64xf32>
    %78 = vector.broadcast %71 : vector<1x64xf32> to vector<16x64xf32>
    %79 = arith.addf %78, %77 : vector<16x64xf32>
    %c1_84 = arith.constant 1 : index
    %c0_85 = arith.constant 0 : index
    %c0_86 = arith.constant 0 : index
    %80 = vector.load %arg6[%c1_84, %c0_85, %c0_86] : memref<3x16x16xf32, #tpu.memory_space<vmem>>, vector<1x16x16xf32>
    %81 = vector.shape_cast %80 : vector<1x16x16xf32> to vector<16x16xf32>
    %c1_87 = arith.constant 1 : index
    %c0_88 = arith.constant 0 : index
    %c0_89 = arith.constant 0 : index
    %82 = vector.load %arg10[%c1_87, %c0_88, %c0_89] : memref<3x64x64xf32, #tpu.memory_space<vmem>>, vector<1x64x64xf32>
    %83 = vector.shape_cast %82 : vector<1x64x64xf32> to vector<64x64xf32>
    %cst_90 = arith.constant dense<0.000000e+00> : vector<16x64xf32>
    %84 = tpu.matmul %70, %83, %cst_90 {dimension_numbers = #tpu.dot_dimension_numbers<[1], [0], [0], [1], [0, 0, 1, 1], [], []>} : vector<16x64xf32>, vector<64x64xf32>, vector<16x64xf32> -> vector<16x64xf32>
    %cst_91 = arith.constant dense<0.000000e+00> : vector<16x64xf32>
    %85 = tpu.matmul %81, %84, %cst_91 {dimension_numbers = #tpu.dot_dimension_numbers<[1], [0], [0], [1], [0, 0, 1, 1], [], []>} : vector<16x16xf32>, vector<16x64xf32>, vector<16x64xf32> -> vector<16x64xf32>
    %86 = arith.addf %79, %85 : vector<16x64xf32>
    %c2_92 = arith.constant 2 : index
    %c0_93 = arith.constant 0 : index
    %c0_94 = arith.constant 0 : index
    %87 = vector.load %arg6[%c2_92, %c0_93, %c0_94] : memref<3x16x16xf32, #tpu.memory_space<vmem>>, vector<1x16x16xf32>
    %88 = vector.shape_cast %87 : vector<1x16x16xf32> to vector<16x16xf32>
    %c2_95 = arith.constant 2 : index
    %c0_96 = arith.constant 0 : index
    %c0_97 = arith.constant 0 : index
    %89 = vector.load %arg10[%c2_95, %c0_96, %c0_97] : memref<3x64x64xf32, #tpu.memory_space<vmem>>, vector<1x64x64xf32>
    %90 = vector.shape_cast %89 : vector<1x64x64xf32> to vector<64x64xf32>
    %cst_98 = arith.constant dense<0.000000e+00> : vector<16x64xf32>
    %91 = tpu.matmul %70, %90, %cst_98 {dimension_numbers = #tpu.dot_dimension_numbers<[1], [0], [0], [1], [0, 0, 1, 1], [], []>} : vector<16x64xf32>, vector<64x64xf32>, vector<16x64xf32> -> vector<16x64xf32>
    %cst_99 = arith.constant dense<0.000000e+00> : vector<16x64xf32>
    %92 = tpu.matmul %88, %91, %cst_99 {dimension_numbers = #tpu.dot_dimension_numbers<[1], [0], [0], [1], [0, 0, 1, 1], [], []>} : vector<16x16xf32>, vector<16x64xf32>, vector<16x64xf32> -> vector<16x64xf32>
    %93 = arith.addf %86, %92 : vector<16x64xf32>
    %cst_100 = arith.constant 0.000000e+00 : f32
    %94 = vector.broadcast %cst_100 : f32 to vector<16x64xf32>
    %95 = arith.maximumf %93, %94 : vector<16x64xf32>
    %c0_101 = arith.constant 0 : index
    %c0_102 = arith.constant 0 : index
    %96 = vector.load %arg13[%c0_101, %c0_102] : memref<1x64xf32, #tpu.memory_space<vmem>>, vector<1x64xf32>
    %c0_103 = arith.constant 0 : index
    %c0_104 = arith.constant 0 : index
    %c0_105 = arith.constant 0 : index
    %97 = vector.load %arg6[%c0_103, %c0_104, %c0_105] : memref<3x16x16xf32, #tpu.memory_space<vmem>>, vector<1x16x16xf32>
    %98 = vector.shape_cast %97 : vector<1x16x16xf32> to vector<16x16xf32>
    %c0_106 = arith.constant 0 : index
    %c0_107 = arith.constant 0 : index
    %c0_108 = arith.constant 0 : index
    %99 = vector.load %arg12[%c0_106, %c0_107, %c0_108] : memref<3x64x64xf32, #tpu.memory_space<vmem>>, vector<1x64x64xf32>
    %100 = vector.shape_cast %99 : vector<1x64x64xf32> to vector<64x64xf32>
    %cst_109 = arith.constant dense<0.000000e+00> : vector<16x64xf32>
    %101 = tpu.matmul %95, %100, %cst_109 {dimension_numbers = #tpu.dot_dimension_numbers<[1], [0], [0], [1], [0, 0, 1, 1], [], []>} : vector<16x64xf32>, vector<64x64xf32>, vector<16x64xf32> -> vector<16x64xf32>
    %cst_110 = arith.constant dense<0.000000e+00> : vector<16x64xf32>
    %102 = tpu.matmul %98, %101, %cst_110 {dimension_numbers = #tpu.dot_dimension_numbers<[1], [0], [0], [1], [0, 0, 1, 1], [], []>} : vector<16x16xf32>, vector<16x64xf32>, vector<16x64xf32> -> vector<16x64xf32>
    %103 = vector.broadcast %96 : vector<1x64xf32> to vector<16x64xf32>
    %104 = arith.addf %103, %102 : vector<16x64xf32>
    %c1_111 = arith.constant 1 : index
    %c0_112 = arith.constant 0 : index
    %c0_113 = arith.constant 0 : index
    %105 = vector.load %arg6[%c1_111, %c0_112, %c0_113] : memref<3x16x16xf32, #tpu.memory_space<vmem>>, vector<1x16x16xf32>
    %106 = vector.shape_cast %105 : vector<1x16x16xf32> to vector<16x16xf32>
    %c1_114 = arith.constant 1 : index
    %c0_115 = arith.constant 0 : index
    %c0_116 = arith.constant 0 : index
    %107 = vector.load %arg12[%c1_114, %c0_115, %c0_116] : memref<3x64x64xf32, #tpu.memory_space<vmem>>, vector<1x64x64xf32>
    %108 = vector.shape_cast %107 : vector<1x64x64xf32> to vector<64x64xf32>
    %cst_117 = arith.constant dense<0.000000e+00> : vector<16x64xf32>
    %109 = tpu.matmul %95, %108, %cst_117 {dimension_numbers = #tpu.dot_dimension_numbers<[1], [0], [0], [1], [0, 0, 1, 1], [], []>} : vector<16x64xf32>, vector<64x64xf32>, vector<16x64xf32> -> vector<16x64xf32>
    %cst_118 = arith.constant dense<0.000000e+00> : vector<16x64xf32>
    %110 = tpu.matmul %106, %109, %cst_118 {dimension_numbers = #tpu.dot_dimension_numbers<[1], [0], [0], [1], [0, 0, 1, 1], [], []>} : vector<16x16xf32>, vector<16x64xf32>, vector<16x64xf32> -> vector<16x64xf32>
    %111 = arith.addf %104, %110 : vector<16x64xf32>
    %c2_119 = arith.constant 2 : index
    %c0_120 = arith.constant 0 : index
    %c0_121 = arith.constant 0 : index
    %112 = vector.load %arg6[%c2_119, %c0_120, %c0_121] : memref<3x16x16xf32, #tpu.memory_space<vmem>>, vector<1x16x16xf32>
    %113 = vector.shape_cast %112 : vector<1x16x16xf32> to vector<16x16xf32>
    %c2_122 = arith.constant 2 : index
    %c0_123 = arith.constant 0 : index
    %c0_124 = arith.constant 0 : index
    %114 = vector.load %arg12[%c2_122, %c0_123, %c0_124] : memref<3x64x64xf32, #tpu.memory_space<vmem>>, vector<1x64x64xf32>
    %115 = vector.shape_cast %114 : vector<1x64x64xf32> to vector<64x64xf32>
    %cst_125 = arith.constant dense<0.000000e+00> : vector<16x64xf32>
    %116 = tpu.matmul %95, %115, %cst_125 {dimension_numbers = #tpu.dot_dimension_numbers<[1], [0], [0], [1], [0, 0, 1, 1], [], []>} : vector<16x64xf32>, vector<64x64xf32>, vector<16x64xf32> -> vector<16x64xf32>
    %cst_126 = arith.constant dense<0.000000e+00> : vector<16x64xf32>
    %117 = tpu.matmul %113, %116, %cst_126 {dimension_numbers = #tpu.dot_dimension_numbers<[1], [0], [0], [1], [0, 0, 1, 1], [], []>} : vector<16x16xf32>, vector<16x64xf32>, vector<16x64xf32> -> vector<16x64xf32>
    %118 = arith.addf %111, %117 : vector<16x64xf32>
    %cst_127 = arith.constant 0.000000e+00 : f32
    %119 = vector.broadcast %cst_127 : f32 to vector<16x64xf32>
    %120 = arith.maximumf %118, %119 : vector<16x64xf32>
    %121 = arith.addf %120, %70 : vector<16x64xf32>
    %c0_128 = arith.constant 0 : index
    %c0_129 = arith.constant 0 : index
    %c0_130 = arith.constant 0 : index
    %122 = vector.load %arg14[%c0_128, %c0_129, %c0_130] : memref<1x16x64xf32, #tpu.memory_space<vmem>>, vector<1x16x64xf32>
    %123 = vector.shape_cast %122 : vector<1x16x64xf32> to vector<16x64xf32>
    %124 = vector.shape_cast %121 : vector<16x64xf32> to vector<1x16x64xf32>
    tpu.vector_store %arg14[%c0_128, %c0_129, %c0_130], %124 {strides = array<i32>} : memref<1x16x64xf32, #tpu.memory_space<vmem>>, vector<1x16x64xf32>,
    return
  }
  func.func @transform_0(%arg0: i32) -> (i32, i32, i32) {
    %c0_i32 = arith.constant 0 : i32
    %c0_i32_0 = arith.constant 0 : i32
    %c0_i32_1 = arith.constant 0 : i32
    return %arg0, %c0_i32, %c0_i32_0 : i32, i32, i32
  }
  func.func @transform_1(%arg0: i32) -> (i32, i32, i32) {
    %c0_i32 = arith.constant 0 : i32
    %c0_i32_0 = arith.constant 0 : i32
    %c0_i32_1 = arith.constant 0 : i32
    return %arg0, %c0_i32, %c0_i32_0 : i32, i32, i32
  }
  func.func @transform_2(%arg0: i32) -> (i32, i32, i32) {
    %c0_i32 = arith.constant 0 : i32
    %c0_i32_0 = arith.constant 0 : i32
    %c0_i32_1 = arith.constant 0 : i32
    %c0_i32_2 = arith.constant 0 : i32
    return %c0_i32, %c0_i32_0, %c0_i32_1 : i32, i32, i32
  }
  func.func @transform_3(%arg0: i32) -> (i32, i32, i32) {
    %c0_i32 = arith.constant 0 : i32
    %c0_i32_0 = arith.constant 0 : i32
    %c0_i32_1 = arith.constant 0 : i32
    %c0_i32_2 = arith.constant 0 : i32
    return %c0_i32, %c0_i32_0, %c0_i32_1 : i32, i32, i32
  }
  func.func @transform_4(%arg0: i32) -> (i32, i32) {
    %c0_i32 = arith.constant 0 : i32
    %c0_i32_0 = arith.constant 0 : i32
    %c0_i32_1 = arith.constant 0 : i32
    return %c0_i32, %c0_i32_0 : i32, i32
  }
  func.func @transform_5(%arg0: i32) -> (i32, i32, i32) {
    %c0_i32 = arith.constant 0 : i32
    %c0_i32_0 = arith.constant 0 : i32
    %c0_i32_1 = arith.constant 0 : i32
    %c0_i32_2 = arith.constant 0 : i32
    return %c0_i32, %c0_i32_0, %c0_i32_1 : i32, i32, i32
  }
  func.func @transform_6(%arg0: i32) -> (i32, i32, i32) {
    %c0_i32 = arith.constant 0 : i32
    %c0_i32_0 = arith.constant 0 : i32
    %c0_i32_1 = arith.constant 0 : i32
    %c0_i32_2 = arith.constant 0 : i32
    return %c0_i32, %c0_i32_0, %c0_i32_1 : i32, i32, i32
  }
  func.func @transform_7(%arg0: i32) -> (i32, i32, i32) {
    %c0_i32 = arith.constant 0 : i32
    %c0_i32_0 = arith.constant 0 : i32
    %c0_i32_1 = arith.constant 0 : i32
    %c0_i32_2 = arith.constant 0 : i32
    return %c0_i32, %c0_i32_0, %c0_i32_1 : i32, i32, i32
  }
  func.func @transform_8(%arg0: i32) -> (i32, i32) {
    %c0_i32 = arith.constant 0 : i32
    %c0_i32_0 = arith.constant 0 : i32
    %c0_i32_1 = arith.constant 0 : i32
    return %c0_i32, %c0_i32_0 : i32, i32
  }
  func.func @transform_9(%arg0: i32) -> (i32, i32, i32) {
    %c0_i32 = arith.constant 0 : i32
    %c0_i32_0 = arith.constant 0 : i32
    %c0_i32_1 = arith.constant 0 : i32
    %c0_i32_2 = arith.constant 0 : i32
    return %c0_i32, %c0_i32_0, %c0_i32_1 : i32, i32, i32
  }
  func.func @transform_10(%arg0: i32) -> (i32, i32) {
    %c0_i32 = arith.constant 0 : i32
    %c0_i32_0 = arith.constant 0 : i32
    %c0_i32_1 = arith.constant 0 : i32
    return %c0_i32, %c0_i32_0 : i32, i32
  }
  func.func @transform_11(%arg0: i32) -> (i32, i32, i32) {
    %c0_i32 = arith.constant 0 : i32
    %c0_i32_0 = arith.constant 0 : i32
    %c0_i32_1 = arith.constant 0 : i32
    %c0_i32_2 = arith.constant 0 : i32
    return %c0_i32, %c0_i32_0, %c0_i32_1 : i32, i32, i32
  }
  func.func @transform_12(%arg0: i32) -> (i32, i32) {
    %c0_i32 = arith.constant 0 : i32
    %c0_i32_0 = arith.constant 0 : i32
    %c0_i32_1 = arith.constant 0 : i32
    return %c0_i32, %c0_i32_0 : i32, i32
  }
  func.func @transform_13(%arg0: i32) -> (i32, i32, i32) {
    %c0_i32 = arith.constant 0 : i32
    %c0_i32_0 = arith.constant 0 : i32
    %c0_i32_1 = arith.constant 0 : i32
    return %arg0, %c0_i32, %c0_i32_0 : i32, i32, i32
  }
}

</mosaic_0001>

<bundles_post_ra>
// kernel: tpu_custom_call.1
= control target key start
LH: loop header
LB: loop body
LE: loop exit
PB: predicated region body
PF: predicated region fallthrough
CT: control target
= control target key end

     0   :  { %s4974_s0 = inlined_call_operand.vmem [shape: f32[2,8,64], index: 0, kind: input, shape index: {}]   ;;  %s4975_s1 = inlined_call_operand.vmem [shape: f32[2,16,64], index: 1, kind: input, shape index: {}]   ;;  %s4976_s2 = inlined_call_operand.vmem [shape: f32[4,16,8], index: 2, kind: input, shape index: {}]   ;;  %s4977_s3 = inlined_call_operand.hbm [shape: f32[4,64,64], index: 3, kind: input, shape index: {}]   ;;  %s4978_s4 = inlined_call_operand.vmem [shape: f32[1,64], index: 4, kind: input, shape index: {}]   ;;  %s4979_s5 = inlined_call_operand.vmem [shape: f32[3,16,16], index: 5, kind: input, shape index: {}]   ;;  %s4980_s6 = inlined_call_operand.hbm [shape: f32[3,64,64], index: 6, kind: input, shape index: {}]   ;;  %s4981_s7 = inlined_call_operand.hbm [shape: f32[3,64,64], index: 7, kind: input, shape index: {}]   ;;  %s4982_s8 = inlined_call_operand.vmem [shape: f32[1,64], index: 8, kind: input, shape index: {}]   ;;  %s4983_s9 = inlined_call_operand.hbm [shape: f32[3,64,64], index: 9, kind: input, shape index: {}]   ;;  %s4984_s10 = inlined_call_operand.vmem [shape: f32[1,64], index: 10, kind: input, shape index: {}]   ;;  %s4985_s11 = inlined_call_operand.hbm [shape: f32[3,64,64], index: 11, kind: input, shape index: {}]   ;;  %s4986_s12 = inlined_call_operand.vmem [shape: f32[1,64], index: 12, kind: input, shape index: {}]   ;;  %s4987_s13 = inlined_call_operand.hbm [shape: f32[2,16,64], index: 13, kind: output, shape index: {}]  }
   0x1   :  { %5000 = sst [smem:[#allocation23_spill]] %s4980_s6 }
   0x2   :  { %5001 = sst [smem:[#allocation24_spill]] %s4986_s12 }
   0x3   :  { %5002 = sst [smem:[#allocation25_spill]] %s4987_s13 }
   0x4   :  { %18 = vsyncpa [#allocation3], 0 }
   0x5   :  { %19 = vsyncpa [#allocation6], 0 }
   0x6   :  { %20 = vsyncpa [#allocation9], 0 }
   0x7   :  { %21 = vsyncpa [#allocation4], 0 }
   0x8   :  { %23 = vsyncpa [#allocation4 + $0x1], 0  ;;  %s4507_s25 = smov 0   ;;  %s4509_s26 = smov 0  }
   0x9   :  { %s4511_s27 = smov 0   ;;  %s4513_s28 = smov 0  }
   0xa LB: > { %5003 = sst [smem:[#allocation16_spill]] %s4410_s25  ;;  %s4528_s29 = sadd.s32 4294967295, %s4422_s28   ;;  %s4422_s28 = sphi %s4513_s28, %s5031_s28   ;;  %s4418_s27 = sphi %s4511_s27, %s5033_s27   ;;  %s4414_s26 = sphi %s4509_s26, %s5035_s26   ;;  %s4410_s25 = sphi %s4507_s25, %s5034_s25  }
   0xb   : > { %5004 = sst [smem:[#allocation17_spill]] %s4418_s27  ;;  %s3119_s30 = sadd.s32 4294967294, %s4422_s28  }
   0xc   : > { %5005 = sst [smem:[#allocation18_spill]] %s4422_s28  ;;  %s4532_s14 = sadd.s32 1, %s4422_s28  }
   0xd   : > { %5006 = sst [smem:[#allocation19_spill]] %s4532_s14  ;;  %s319_s15 = sadd.s32 1, %s4418_s27 }
   0xe   : > { %s316_s16 = ssub.s32 %s4422_s28, %s4532_s14  ;;  %p329_p0 = scmp.ne.s32.totalorder %s4418_s27, %s4414_s26 }
   0xf   : > { %p317_p1 = scmp.eq.s32.totalorder %s316_s16, 0  ;;  %p330_p2 = scmp.eq.s32.totalorder %s4528_s29, 1 }
  0x10   : > { %p335_p3 = scmp.ne.s32.totalorder %s4414_s26, %s4410_s25  ;;  %p336_p4 = scmp.eq.s32.totalorder %s3119_s30, 1 }
  0x11   : > { %s4543_s17 = scalar_select %p317_p1, %s4418_s27, %s319_s15  }
  0x12   : > { %p4545_p5 = por %p330_p2, %p329_p0  ;;  %p4549_p6 = por %p336_p4, %p335_p3 }
  0x13   : > { %5007 = sst [smem:[#allocation20_spill]] %s4543_s17  ;;  %p3120_p7 = scmp.ge.s32.totalorder %s4422_s28, 1 }
  0x14   : > { %s5008_s18 = scalar_select %p4545_p5, 1, 0 }
  0x15   : > { %s5010_s19 = scalar_select %p4549_p6, 1, 0 }
  0x16   : > { %5009 = sst [smem:[#allocation21_spill]] %s5008_s18  ;;  %p343_p8 = scmp.lt.s32.totalorder %s4422_s28, 3 }
  0x17   : > { %5011 = sst [smem:[#allocation22_spill]] %s5010_s19  ;;  %p4993_p9 = scmp.eq.s32.totalorder %s4528_s29, 0 }
  0x18   : > { %p4556_p10 = pnand %p3120_p7, %p343_p8  ;;  %s4424_s21 = smov [#allocation5]  }
  0x19   : > { %s377_s22 = sshll.u32 %s4424_s21, 4  ;;  %s4425_s24 = smov [#allocation8]   ;;  %s4562_s22 = int_to_ptr.vmem [resolvable:$true] %s377_s22 }
  0x1a   : > { %s5012_s20 = scalar_select %p4556_p10, 1, 0 }
  0x1b   : > { %p4133_p11 = pneg %p4556_p10  ;;  %s406_s30 = sshll.u32 %s4425_s24, 4  ;;  %s4570_s30 = int_to_ptr.vmem [resolvable:$true] %s406_s30 }
  0x1c   : > { %s4426_s15 = smov [#allocation2]   ;;  %s5014_s6 = sld [smem:[#allocation23_spill]] }
  0x1d   : > { %p4566_p12 = pnand %p4993_p9, %p4133_p11  ;;  %s4572_s16 = sshll.u32 %s4426_s15, 4  ;;  %s359_s16 = int_to_ptr.vmem [resolvable:$true] %s4572_s16 }
  0x1f   : > { %p4582_p0 = pneg %p4566_p12 }
  0x22   : > { %s4208_s14 = scalar_lea.hbm %s5014_s6, 3072 }
  0x23   : > { %p4209_p13 = scmp.ne.s32.totalorder %s5014_s6, %s4208_s14  ;;  %p4215_p3 = scmp.lt.u32.totalorder %s4208_s14, %s5014_s6 }
  0x25   : > { %p4211_p1 = pnand %p4582_p0, %p4209_p13 }
  0x27   : > { %p4212_p2 = pneg %p4211_p1 }
  0x29   : > { %p4217_p4 = pnand %p4215_p3, %p4212_p2 }
  0x2b   : > { %4220 = shalt.err (!%p4217_p4)
}
  0x2c   : > { %s4221_s27 = scalar_lea.vmem %s4562_s22, 3072  ;;  %p4229_p9 = scmp.lt.s32.totalorder %s4562_s22, %s4562_s22 }
  0x2d   : > { %p4222_p7 = scmp.ne.s32.totalorder %s4562_s22, %s4221_s27  ;;  %p4230_p6 = scmp.lt.s32.totalorder %s4221_s27, %s4221_s27 }
  0x2f   : > { %p4224_p8 = pnand %p4222_p7, %p4582_p0  ;;  %p4231_p13 = por %p4230_p6, %p4229_p9 }
  0x31   : > { %p4225_p11 = pneg %p4224_p8 }
  0x33   : > { %p4232_p1 = pnand %p4231_p13, %p4225_p11 }
  0x35   : > { %4235 = shalt.err (!%p4232_p1)
}
  0x36   : > { %s4427_s17 = smov 128   ;;  %s4428_s14 = smov 8  }
  0x37   : > { %4139 = dma.hbm_to_vmem [thread:$0]  (!%p4566_p12), %s5014_s6, 3072, %s4562_s22, [#allocation6], %s4427_s17, %s4427_s17, %s4428_s14  }
  0x38   : > { %s4236_s27 = scalar_lea.hbm %s4983_s9, 3072 }
  0x39   : > { %p4237_p6 = scmp.ne.s32.totalorder %s4983_s9, %s4236_s27  ;;  %p4243_p3 = scmp.lt.u32.totalorder %s4236_s27, %s4983_s9 }
  0x3b   : > { %p4239_p9 = pnand %p4237_p6, %p4582_p0 }
  0x3d   : > { %p4240_p2 = pneg %p4239_p9 }
  0x3f   : > { %p4245_p4 = pnand %p4243_p3, %p4240_p2 }
  0x41   : > { %4248 = shalt.err (!%p4245_p4)
}
  0x42   : > { %s4249_s22 = scalar_lea.vmem %s4570_s30, 3072  ;;  %p4257_p13 = scmp.lt.s32.totalorder %s4570_s30, %s4570_s30 }
  0x43   : > { %p4250_p7 = scmp.ne.s32.totalorder %s4570_s30, %s4249_s22  ;;  %p4258_p1 = scmp.lt.s32.totalorder %s4249_s22, %s4249_s22 }
  0x45   : > { %p4252_p8 = pnand %p4250_p7, %p4582_p0  ;;  %p4259_p6 = por %p4258_p1, %p4257_p13 }
  0x47   : > { %p4253_p11 = pneg %p4252_p8 }
  0x49   : > { %p4260_p9 = pnand %p4259_p6, %p4253_p11 }
  0x4b   : > { %4263 = shalt.err (!%p4260_p9)
}
  0x4c   : > { %4145 = dma.hbm_to_vmem [thread:$0]  (!%p4566_p12), %s4983_s9, 3072, %s4570_s30, [#allocation9], %s4427_s17, %s4427_s17, %s4428_s14  }
  0x4d   : > { %s4264_s19 = scalar_lea.hbm %s4977_s3, 4096 }
  0x4e   : > { %p4265_p2 = scmp.ne.s32.totalorder %s4977_s3, %s4264_s19  ;;  %p4271_p7 = scmp.lt.u32.totalorder %s4264_s19, %s4977_s3 }
  0x50   : > { %p4267_p3 = pnand %p4265_p2, %p4582_p0 }
  0x52   : > { %p4268_p4 = pneg %p4267_p3 }
  0x54   : > { %p4273_p8 = pnand %p4271_p7, %p4268_p4 }
  0x56   : > { %4276 = shalt.err (!%p4273_p8)
}
  0x57   : > { %s4277_s22 = scalar_lea.vmem %s359_s16, 4096  ;;  %p4285_p6 = scmp.lt.s32.totalorder %s359_s16, %s359_s16 }
  0x58   : > { %p4278_p11 = scmp.ne.s32.totalorder %s359_s16, %s4277_s22  ;;  %p4286_p9 = scmp.lt.s32.totalorder %s4277_s22, %s4277_s22 }
  0x5a   : > { %p4280_p13 = pnand %p4278_p11, %p4582_p0  ;;  %p4287_p5 = por %p4286_p9, %p4285_p6 }
  0x5c   : > { %p4281_p1 = pneg %p4280_p13 }
  0x5e   : > { %p4288_p10 = pnand %p4287_p5, %p4281_p1 }
  0x60   : > { %4291 = shalt.err (!%p4288_p10)
}
  0x61   : > { %4136 = dma.hbm_to_vmem [thread:$0]  (!%p4566_p12), %s4977_s3, 4096, %s359_s16, [#allocation3], %s4427_s17, %s4427_s17, %s4428_s14  }
  0x62   : > { %s4429_s13 = smov [#allocation7]   ;;  %s4430_s18 = smov [#allocation10]  }
  0x63   : > { %s390_s28 = sshll.u32 %s4429_s13, 4  ;;  %s422_s19 = sshll.u32 %s4430_s18, 4  ;;  %s391_s28 = int_to_ptr.vmem [resolvable:$true] %s390_s28  ;;  %s423_s19 = int_to_ptr.vmem [resolvable:$true] %s422_s19 }
  0x64   : > { %s4292_s15 = scalar_lea.hbm %s4981_s7, 3072 }
  0x65   : > { %p4293_p5 = scmp.ne.s32.totalorder %s4981_s7, %s4292_s15  ;;  %p4299_p3 = scmp.lt.u32.totalorder %s4292_s15, %s4981_s7 }
  0x67   : > { %p4295_p10 = pnand %p4293_p5, %p4582_p0 }
  0x69   : > { %p4296_p2 = pneg %p4295_p10 }
  0x6b   : > { %p4301_p4 = pnand %p4299_p3, %p4296_p2 }
  0x6d   : > { %4304 = shalt.err (!%p4301_p4)
}
  0x6e   : > { %s4305_s16 = scalar_lea.vmem %s391_s28, 3072  ;;  %p4313_p13 = scmp.lt.s32.totalorder %s391_s28, %s391_s28 }
  0x6f   : > { %p4306_p7 = scmp.ne.s32.totalorder %s391_s28, %s4305_s16  ;;  %p4314_p1 = scmp.lt.s32.totalorder %s4305_s16, %s4305_s16 }
  0x71   : > { %p4308_p8 = pnand %p4306_p7, %p4582_p0  ;;  %p4315_p6 = por %p4314_p1, %p4313_p13 }
  0x73   : > { %p4309_p11 = pneg %p4308_p8 }
  0x75   : > { %p4316_p9 = pnand %p4315_p6, %p4309_p11 }
  0x77   : > { %4319 = shalt.err (!%p4316_p9)
}
  0x78   : > { %4142 = dma.hbm_to_vmem [thread:$0]  (!%p4566_p12), %s4981_s7, 3072, %s391_s28, [#allocation6], %s4427_s17, %s4427_s17, %s4428_s14  }
  0x79   : > { %s4320_s21 = scalar_lea.hbm %s4985_s11, 3072 }
  0x7a   : > { %p4321_p5 = scmp.ne.s32.totalorder %s4985_s11, %s4320_s21  ;;  %p4327_p3 = scmp.lt.u32.totalorder %s4320_s21, %s4985_s11 }
  0x7c   : > { %p4323_p10 = pnand %p4321_p5, %p4582_p0 }
  0x7e   : > { %p4324_p2 = pneg %p4323_p10 }
  0x80   : > { %p4329_p4 = pnand %p4327_p3, %p4324_p2 }
  0x82   : > { %4332 = shalt.err (!%p4329_p4)
}
  0x83   : > { %s4333_s30 = scalar_lea.vmem %s423_s19, 3072  ;;  %p4341_p13 = scmp.lt.s32.totalorder %s423_s19, %s423_s19 }
  0x84   : > { %p4334_p7 = scmp.ne.s32.totalorder %s423_s19, %s4333_s30  ;;  %p4342_p1 = scmp.lt.s32.totalorder %s4333_s30, %s4333_s30 }
  0x86   : > { %p4336_p8 = pnand %p4334_p7, %p4582_p0  ;;  %p4343_p6 = por %p4342_p1, %p4341_p13 }
  0x88   : > { %p4337_p11 = pneg %p4336_p8 }
  0x8a   : > { %p4344_p9 = pnand %p4343_p6, %p4337_p11 }
  0x8c   : > { %4347 = shalt.err (!%p4344_p9)
}
  0x8d   : > { %4148 = dma.hbm_to_vmem [thread:$0]  (!%p4566_p12), %s4985_s11, 3072, %s423_s19, [#allocation9], %s4427_s17, %s4427_s17, %s4428_s14  }
  0x8e   : > { %p5016_p5 = scmp.ne.s32.totalorder %s5012_s20, 0 }
  0x8f   : > { %p5017_p0 = scmp.eq.s32.totalorder (!%p5016_p5), %s4528_s29, 0 }
  0x90   : > { %456 = sbr.rel (%p5016_p5) target bundleno = 3146 (0xc4a), region = 72 }
  0x97   : > { %4393 = dma.done.wait (%p5017_p0), [#allocation3], 4096   ;;  %p5018_p10 = pmov %p5017_p0 }
  0x98   : > { %p5019_p2 = pmov %p5017_p0 }
  0x99   : > { %4395 = vsyncadd (%p5018_p10), [#allocation3], 4294963200 }
  0x9a   : > { %4397 = dma.done.wait (%p5019_p2), [#allocation6], 6144   ;;  %p5020_p3 = pmov %p5017_p0 }
  0x9b   : > { %p5021_p4 = pmov %p5017_p0 }
  0x9c   : > { %4399 = vsyncadd (%p5020_p3), [#allocation6], 4294961152 }
  0x9d   : > { %4401 = dma.done.wait (%p5021_p4), [#allocation9], 6144   ;;  %p5022_p12 = pmov %p5017_p0 }
  0x9e   : > { %v4431_v0 = vmov 0.0|0.0   ;;  %vm4432_vm0 = vmmov 0   ;;  %v4433_v1 = vmov 0.0   ;;  %v535_v2 = vld [vmem:[#allocation2] sm:$0xff]  ;;  %v536_v3 = vld [vmem:[#allocation2 + $0x8] sm:$0xff]  ;;  %v537_v4 = vld [vmem:[#allocation2 + $0x10] sm:$0xff] }
  0x9f   : > { %4403 = vsyncadd (%p5022_p12), [#allocation9], 4294961152  ;;  %3803 = vmatprep.subr.bf16.mxu0 %v4431_v0  ;;  %3432 = vmatprep.mubr.msk.f32.mxu0 %vm4432_vm0, %v4433_v1  ;;  %v3804_v5 = vpack.c.bf16 %v536_v3, %v535_v2  ;;  %v538_v6 = vld [vmem:[#allocation2 + $0x18] sm:$0xff]  ;;  %p520_p7 = scmp.lt.s32.totalorder %s4528_s29, 1  ;;  %v539_v8 = vld [vmem:[#allocation2 + $0x20] sm:$0xff]  ;;  %vm543_vm1 = vcmask 523264  }
  0xa0   : > { %v3807_v7 = vpack.c.bf16 %v538_v6, %v537_v4  ;;  %v540_v9 = vld [vmem:[#allocation2 + $0x28] sm:$0xff]  ;;  %v541_v11 = vld [vmem:[#allocation2 + $0x30] sm:$0xff]  ;;  %v542_v12 = vld [vmem:[#allocation2 + $0x38] sm:$0xff]  ;;  %vm617_vm2 = vcmask 64512   ;;  %vm1383_vm3 = vcmask 130048   ;;  %s517_s12 = sand.u32 1, %s4414_s26  }
  0xa1   : > { %3805 = vmatpush3.bf16.msra.mxu0 %v3804_v5  ;;  %s4716_s25 = scalar_select %p520_p7, %s4528_s29, 1  ;;  %v3810_v10 = vpack.c.bf16 %v540_v9, %v539_v8  ;;  %v3813_v13 = vpack.c.bf16 %v542_v12, %v541_v11  ;;  %v533_v15 = vld [vmem:[%s4976_s2] sm:$0xff]  ;;  %v877_v17 = vld [vmem:[#allocation2 + $0x88] sm:$0xff]  ;;  %v878_v19 = vld [vmem:[#allocation2 + $0x90] sm:$0xff] }
  0xa2   : > { %3806 = vmatprep.subr.bf16.mxu0 %v4431_v0  ;;  %3437 = vmatprep.mubr.msk.f32.mxu1 %vm617_vm2, %v533_v15  ;;  %v876_v16 = vld [vmem:[#allocation2 + $0x80] sm:$0xff]  ;;  %v879_v20 = vld [vmem:[#allocation2 + $0x98] sm:$0xff]  ;;  %v881_v23 = vld [vmem:[#allocation2 + $0xa8] sm:$0xff]  ;;  %s3133_s13 = sshll.u32 %s517_s12, 4  ;;  %s5023_s24 = sld [smem:[#allocation24_spill]] }
  0xa3   : > { %s3134_s20 = sshll.u32 %s4716_s25, 3  ;;  %v3828_v18 = vpack.c.bf16 %v877_v17, %v876_v16  ;;  %v3831_v21 = vpack.c.bf16 %v879_v20, %v878_v19  ;;  %v880_v22 = vld [vmem:[#allocation2 + $0xa0] sm:$0xff]  ;;  %v882_v25 = vld [vmem:[#allocation2 + $0xb0] sm:$0xff]  ;;  %v883_v26 = vld [vmem:[#allocation2 + $0xb8] sm:$0xff]  ;;  %s3210_s23 = sshll.u32 %s4716_s25, 4 }
  0xa4   : > { %s523_s14 = scalar_lea.vmem %s4974_s0, %s3134_s20  ;;  %v3834_v24 = vpack.c.bf16 %v881_v23, %v880_v22  ;;  %v3837_v27 = vpack.c.bf16 %v883_v26, %v882_v25  ;;  %v711_v28 = vld [vmem:[#allocation2 + $0x40] sm:$0xff]  ;;  %v712_v29 = vld [vmem:[#allocation2 + $0x48] sm:$0xff]  ;;  %v713_v34 = vld [vmem:[#allocation2 + $0x50] sm:$0xff]  ;;  %s528_s19 = scalar_lea.vmem %s4975_s1, %s3210_s23 }
  0xa5   : > { %3808 = vmatpush3.bf16.msra.mxu0 %v3807_v7  ;;  %v4724_v14 = vld [vmem:[%s523_s14] sm:$0xff]  ;;  %v534_v31 = vld [vmem:[%s4976_s2 + $0x8] sm:$0xff]  ;;  %v3816_v32 = vpack.c.bf16 %v712_v29, %v711_v28  ;;  %v714_v35 = vld [vmem:[#allocation2 + $0x58] sm:$0xff]  ;;  %s5024_s15 = sld [smem:[#allocation21_spill]]  ;;  %s3211_s27 = sshll.u32 %s4528_s29, 8 }
  0xa6   : > { %3809 = vmatprep.subr.bf16.mxu0 %v4431_v0  ;;  %v3819_v36 = vpack.c.bf16 %v714_v35, %v713_v34  ;;  %v715_v37 = vld [vmem:[#allocation2 + $0x60] sm:$0xff]  ;;  %v716_v38 = vld [vmem:[#allocation2 + $0x68] sm:$0xff]  ;;  %v717_v40 = vld [vmem:[#allocation2 + $0x70] sm:$0xff]  ;;  %s519_s22 = scalar_lea.vmem [#allocation11], %s3133_s13  ;;  %s5025_s20 = sld [smem:[#allocation25_spill]] }
  0xa7   : > { %v3822_v39 = vpack.c.bf16 %v716_v38, %v715_v37  ;;  %v718_v41 = vld [vmem:[#allocation2 + $0x78] sm:$0xff]  ;;  %v3141_v43 = vld [vmem:[%s4976_s2 + $0x10] sm:$0xff]  ;;  %v3146_v49 = vld [vmem:[%s4976_s2 + $0x20] sm:$0xff]  ;;  %s2995_s30 = sshll.u32 %s519_s22, 4  ;;  %s4933_s29 = scalar_lea.sflag [#allocation4], %s517_s12  ;;  %s4928_s30 = int_to_ptr.vmem [resolvable:$true] %s2995_s30 }
  0xa8   : > { %v3825_v42 = vpack.c.bf16 %v718_v41, %v717_v40  ;;  %v3142_v47 = vld [vmem:[%s4976_s2 + $0x18] sm:$0xff]  ;;  %v1041_v50 = vld [vmem:[#allocation2 + $0xc0] sm:$0xff]  ;;  %v1042_v51 = vld [vmem:[#allocation2 + $0xc8] sm:$0xff]  ;;  %s4348_s17 = scalar_lea.vmem %s4928_s30, 256  ;;  %s4434_s14 = smov [#allocation11]  }
  0xa9   : > { %3811 = vmatpush3.bf16.msra.mxu0 %v3810_v10  ;;  %v3147_v52 = vld [vmem:[%s4976_s2 + $0x28] sm:$0xff]  ;;  %v3840_v53 = vpack.c.bf16 %v1042_v51, %v1041_v50  ;;  %v1043_v54 = vld [vmem:[#allocation2 + $0xd0] sm:$0xff]  ;;  %v1044_v55 = vld [vmem:[#allocation2 + $0xd8] sm:$0xff]  ;;  %p4349_p8 = scmp.ne.s32.totalorder %s4928_s30, %s4348_s17 }
  0xaa   : > { %3812 = vmatprep.subr.bf16.mxu0 %v4431_v0  ;;  %v3843_v56 = vpack.c.bf16 %v1044_v55, %v1043_v54  ;;  %v1045_v57 = vld [vmem:[#allocation2 + $0xe0] sm:$0xff]  ;;  %v1046_v58 = vld [vmem:[#allocation2 + $0xe8] sm:$0xff]  ;;  %v1047_v60 = vld [vmem:[#allocation2 + $0xf0] sm:$0xff] }
  0xab   : > { %v3846_v59 = vpack.c.bf16 %v1046_v58, %v1045_v57  ;;  %v1048_v61 = vld [vmem:[#allocation2 + $0xf8] sm:$0xff]  ;;  %v3151_v63 = vld [vmem:[%s4976_s2 + $0x30] sm:$0xff]  ;;  %v1212_v2 = vld [vmem:[#allocation7 + $0x8] sm:$0xff]  ;;  %p5026_p11 = scmp.ne.s32.totalorder %s5024_s15, 0 }
  0xac   : > { %v3849_v62 = vpack.c.bf16 %v1048_v61, %v1047_v60  ;;  %v1213_v3 = vld [vmem:[#allocation7 + $0x10] sm:$0xff]  ;;  %v1214_v5 = vld [vmem:[#allocation7 + $0x18] sm:$0xff]  ;;  %v1215_v6 = vld [vmem:[#allocation7 + $0x20] sm:$0xff]  ;;  %s4926_s23 = scalar_lea.hbm %s5025_s20, %s3211_s27 }
  0xad   : > { %3814 = vmatpush3.bf16.msra.mxu0 %v3813_v13  ;;  %v1216_v7 = vld [vmem:[#allocation7 + $0x28] sm:$0xff]  ;;  %v4784_v8 = vld [vmem:[%s528_s19] sm:$0xff]  ;;  %v1217_v10 = vld [vmem:[#allocation7 + $0x30] sm:$0xff]  ;;  %p4350_p13 = pnand %p4349_p8, %p5026_p11 }
  0xae   : > { %3827 = vmatprep.subr.bf16.mxu0 %v4431_v0  ;;  %v3859_v9 = vpack.c.bf16 %v1216_v7, %v1215_v6  ;;  %v1218_v11 = vld [vmem:[#allocation7 + $0x38] sm:$0xff]  ;;  %v1203_v13 = vld [vmem:[#allocation5] sm:$0xff]  ;;  %v1205_v16 = vld [vmem:[#allocation5 + $0x10] sm:$0xff] }
  0xaf   : > { %v3863_v12 = vpack.c.bf16 %v1218_v11, %v1217_v10  ;;  %v1206_v17 = vld [vmem:[#allocation5 + $0x18] sm:$0xff]  ;;  %v1207_v20 = vld [vmem:[#allocation5 + $0x20] sm:$0xff]  ;;  %v1209_v26 = vld [vmem:[#allocation5 + $0x30] sm:$0xff]  ;;  %p4351_p1 = pneg %p4350_p13 }
  0xb0   : > { %3433 = vmatmul.mubr.msk.f32.vlgmr.msra.gmra.mrb[0].mxu0 %vm543_vm1, %v4724_v14  ;;  %v3871_v19 = vpack.c.bf16 %v1206_v17, %v1205_v16  ;;  %v1737_v29 = vld [vmem:[#allocation7 + $0x80] sm:$0xff]  ;;  %v1739_v34 = vld [vmem:[#allocation7 + $0x90] sm:$0xff]  ;;  %v1740_v35 = vld [vmem:[#allocation7 + $0x98] sm:$0xff] }
  0xb1   : > { %3480 = vmatprep.mubr.msk.f32.mxu0 %vm4432_vm0, %v4433_v1  ;;  %3829 = vmatpush3.bf16.msra.mxu0 %v3828_v18  ;;  %v4788_v18 = vld [vmem:[%s528_s19 + $0x8] sm:$0xff]  ;;  %v1741_v40 = vld [vmem:[#allocation7 + $0xa0] sm:$0xff]  ;;  %v1731_v50 = vld [vmem:[#allocation5 + $0x98] sm:$0xff]  ;;  %s4352_s19 = sshll.u32 %s4434_s14, 4  ;;  %s4353_s19 = int_to_ptr.vmem [resolvable:$false] %s4352_s19 }
  0xb2   : > { %3830 = vmatprep.subr.bf16.mxu0 %v4431_v0  ;;  %v1742_v41 = vld [vmem:[#allocation7 + $0xa8] sm:$0xff]  ;;  %v1734_v55 = vld [vmem:[#allocation5 + $0xb0] sm:$0xff]  ;;  %v4818_v58 = vld [vmem:[%s4979_s5] sm:$0xff]  ;;  %s4354_s25 = scalar_lea.vmem %s4353_s19, 512  ;;  %p4355_p6 = scmp.lt.s32.totalorder %s4928_s30, %s4353_s19 }
  0xb3   : > { %v1484_v60 = vld [vmem:[#allocation7 + $0x48] sm:$0xff]  ;;  %v1490_v10 = vld [vmem:[#allocation7 + $0x78] sm:$0xff]  ;;  %p4356_p9 = scmp.lt.s32.totalorder %s4354_s25, %s4348_s17 }
  0xb4   : > { %v1488_v6 = vld [vmem:[#allocation7 + $0x68] sm:$0xff]  ;;  %v1477_v16 = vld [vmem:[#allocation5 + $0x58] sm:$0xff] }
  0xb5   : > { %3832 = vmatpush3.bf16.msra.mxu0 %v3831_v21  ;;  %v1208_v21 = vld [vmem:[#allocation5 + $0x28] sm:$0xff]  ;;  %p4357_p5 = por %p4356_p9, %p4355_p6 }
  0xb6   : > { %3833 = vmatprep.subr.bf16.mxu0 %v4431_v0  ;;  %v3875_v22 = vpack.c.bf16 %v1208_v21, %v1207_v20  ;;  %v1479_v20 = vld [vmem:[#allocation5 + $0x68] sm:$0xff]  ;;  %v1480_v21 = vld [vmem:[#allocation5 + $0x70] sm:$0xff] }
  0xb7   : > { %p4358_p0 = pnand %p4357_p5, %p4351_p1 }
  0xb9   : > { %3835 = vmatpush3.bf16.msra.mxu0 %v3834_v24  ;;  %v3152_v24 = vld [vmem:[%s4976_s2 + $0x38] sm:$0xff] }
  0xba   : > { %3836 = vmatprep.subr.bf16.mxu0 %v4431_v0 }
  0xbd   : > { %3838 = vmatpush3.bf16.msra.mxu0 %v3837_v27  ;;  %v1210_v27 = vld [vmem:[#allocation5 + $0x38] sm:$0xff] }
  0xbe   : > { %v3879_v28 = vpack.c.bf16 %v1210_v27, %v1209_v26 }
  0xc0   : > { %3481 = vmatmul.mubr.msk.f32.vlgmr.msra.gmra.mrb[2].mxu0 %vm543_vm1, %v4724_v14 }
  0xc1   : > { %3528 = vmatprep.mubr.msk.f32.mxu0 %vm543_vm1, %v4784_v8 }
 0x183   : > { %v613_v30 = vpop.f32.mrb[0].mxu0 }
 0x184   : > { %v3434_v33 = vpop.f32.mrb[1].mxu0  ;;  %3435 = vmatprep.subr.mxu1 %v613_v30 }
 0x185   : > { %3436 = vmatpush3.msra.mxu1 %v613_v30  ;;  %v1738_v30 = vld [vmem:[#allocation7 + $0x88] sm:$0xff] }
 0x186   : > { %3815 = vmatprep.subr.bf16.mxu1 %v4431_v0  ;;  %3438 = vmatmul.mubr.msk.f32.vlgmr.msra.gmra.mrb[0].mxu1 %vm617_vm2, %v534_v31  ;;  %v3923_v31 = vpack.c.bf16 %v1738_v30, %v1737_v29  ;;  %v1984_v30 = vld [vmem:[#allocation8] sm:$0xff] }
 0x187   : > { %3817 = vmatpush3.bf16.msra.mxu1 %v3816_v32  ;;  %3456 = vmatprep.mubr.msk.f32.mxu1 %vm4432_vm0, %v4433_v1  ;;  %v3140_v32 = vld [vmem:[%s4978_s4] ss:$0 sm:$0xff] }
 0x188   : > { %3818 = vmatprep.subr.bf16.mxu1 %v4431_v0 }
 0x18b   : > { %3820 = vmatpush3.bf16.msra.mxu1 %v3819_v36 }
 0x18c   : > { %3821 = vmatprep.subr.bf16.mxu1 %v4431_v0 }
 0x18f   : > { %3823 = vmatpush3.bf16.msra.mxu1 %v3822_v39  ;;  %v3927_v39 = vpack.c.bf16 %v1740_v35, %v1739_v34  ;;  %v1986_v35 = vld [vmem:[#allocation8 + $0x10] sm:$0xff] }
 0x190   : > { %3824 = vmatprep.subr.bf16.mxu1 %v4431_v0 }
 0x193   : > { %3826 = vmatpush3.bf16.msra.mxu1 %v3825_v42  ;;  %v950_v44 = vpop.f32.mrb[2].mxu0  ;;  %v3931_v42 = vpack.c.bf16 %v1742_v41, %v1741_v40  ;;  %v1989_v40 = vld [vmem:[#allocation8 + $0x28] sm:$0xff] }
 0x194   : > { %v3482_v45 = vpop.f32.mrb[3].mxu0 }
 0x196   : > { %3457 = vmatmul.mubr.msk.f32.vlgmr.msra.gmra.mrb[2].mxu1 %vm543_vm1, %v4724_v14 }
 0x197   : > { %3461 = vmatprep.mubr.msk.f32.mxu1 %vm617_vm2, %v3141_v43  ;;  %v1743_v43 = vld [vmem:[#allocation7 + $0xb0] sm:$0xff] }
 0x269   : > { %v785_v46 = vpop.f32.mrb[2].mxu1 }
 0x26a   : > { %v3458_v48 = vpop.f32.mrb[3].mxu1  ;;  %3459 = vmatprep.subr.mxu1 %v785_v46 }
 0x26b   : > { %3460 = vmatpush3.msra.mxu1 %v785_v46  ;;  %v1728_v46 = vld [vmem:[#allocation5 + $0x80] sm:$0xff] }
 0x26c   : > { %3462 = vmatmul.mubr.msk.f32.vlgmr.msra.gmra.mrb[0].mxu1 %vm617_vm2, %v3142_v47  ;;  %3483 = vmatprep.subr.mxu1 %v950_v44  ;;  %v1729_v47 = vld [vmem:[#allocation5 + $0x88] sm:$0xff] }
 0x26d   : > { %3484 = vmatpush3.msra.mxu1 %v950_v44  ;;  %3485 = vmatprep.mubr.msk.f32.mxu1 %vm617_vm2, %v3146_v49  ;;  %v1744_v44 = vld [vmem:[#allocation7 + $0xb8] sm:$0xff]  ;;  %v3939_v48 = vpack.c.bf16 %v1729_v47, %v1728_v46  ;;  %v1730_v49 = vld [vmem:[#allocation5 + $0x90] sm:$0xff]  ;;  %v2319_v46 = vld [vmem:[#allocation8 + $0x88] sm:$0xff] }
 0x26e   : > { %3839 = vmatprep.subr.bf16.mxu1 %v4431_v0  ;;  %v3935_v45 = vpack.c.bf16 %v1744_v44, %v1743_v43  ;;  %v3943_v51 = vpack.c.bf16 %v1731_v50, %v1730_v49  ;;  %v1991_v43 = vld [vmem:[#allocation8 + $0x38] sm:$0xff] }
 0x274   : > { %3486 = vmatmul.mubr.msk.f32.vlgmr.msra.gmra.mrb[0].mxu1 %vm617_vm2, %v3147_v52  ;;  %v1732_v52 = vld [vmem:[#allocation5 + $0xa0] sm:$0xff] }
 0x275   : > { %3841 = vmatpush3.bf16.msra.mxu1 %v3840_v53  ;;  %3504 = vmatprep.mubr.msk.f32.mxu1 %vm4432_vm0, %v4433_v1  ;;  %v1211_v1 = vld [vmem:[#allocation7] sm:$0xff]  ;;  %v1733_v53 = vld [vmem:[#allocation5 + $0xa8] sm:$0xff] }
 0x276   : > { %3842 = vmatprep.subr.bf16.mxu1 %v4431_v0  ;;  %v3851_v4 = vpack.c.bf16 %v1212_v2, %v1211_v1  ;;  %v3947_v54 = vpack.c.bf16 %v1733_v53, %v1732_v52  ;;  %v1485_v2 = vld [vmem:[#allocation7 + $0x50] sm:$0xff] }
 0x277   : > { %v2320_v53 = vld [vmem:[#allocation8 + $0x90] sm:$0xff] }
 0x278   : > { %3852 = vmatprep.subr.bf16.mxu0 %v3851_v4 }
 0x279   : > { %3844 = vmatpush3.bf16.msra.mxu1 %v3843_v56  ;;  %3854 = vmatpush3.bf16.msra.mxu0 %v3851_v4  ;;  %v1735_v56 = vld [vmem:[#allocation5 + $0xb8] sm:$0xff]  ;;  %v4827_v4 = vld [vmem:[%s4979_s5 + $0x8] sm:$0xff] }
 0x27a   : > { %3845 = vmatprep.subr.bf16.mxu1 %v4431_v0  ;;  %v3951_v57 = vpack.c.bf16 %v1735_v56, %v1734_v55 }
 0x27d   : > { %3847 = vmatpush3.bf16.msra.mxu1 %v3846_v59  ;;  %v1483_v59 = vld [vmem:[#allocation7 + $0x40] sm:$0xff] }
 0x27e   : > { %3848 = vmatprep.subr.bf16.mxu1 %v4431_v0  ;;  %v3855_v0 = vpack.c.bf16 %v1214_v5, %v1213_v3  ;;  %v3887_v1 = vpack.c.bf16 %v1484_v60, %v1483_v59  ;;  %v1486_v3 = vld [vmem:[#allocation7 + $0x58] sm:$0xff]  ;;  %v2322_v59 = vld [vmem:[#allocation8 + $0xa0] sm:$0xff]  ;;  %v2323_v60 = vld [vmem:[#allocation8 + $0xa8] sm:$0xff] }
 0x27f   : > { %v3891_v5 = vpack.c.bf16 %v1486_v3, %v1485_v2  ;;  %v2157_v2 = vld [vmem:[#allocation8 + $0x40] sm:$0xff]  ;;  %v2158_v3 = vld [vmem:[#allocation8 + $0x48] sm:$0xff] }
 0x280   : > { %3856 = vmatprep.subr.bf16.mxu0 %v3855_v0 }
 0x281   : > { %3850 = vmatpush3.bf16.msra.mxu1 %v3849_v62  ;;  %3858 = vmatpush3.bf16.msra.mxu0 %v3855_v0  ;;  %v1487_v0 = vld [vmem:[#allocation7 + $0x60] sm:$0xff] }
 0x282   : > { %3860 = vmatprep.subr.bf16.mxu0 %v3859_v9  ;;  %v3895_v7 = vpack.c.bf16 %v1488_v6, %v1487_v0 }
 0x284   : > { %3505 = vmatmul.mubr.msk.f32.vlgmr.msra.gmra.mrb[4].mxu1 %vm543_vm1, %v4724_v14  ;;  %v1204_v14 = vld [vmem:[#allocation5 + $0x8] sm:$0xff] }
 0x285   : > { %3509 = vmatprep.mubr.msk.f32.mxu1 %vm617_vm2, %v3151_v63  ;;  %3862 = vmatpush3.bf16.msra.mxu0 %v3859_v9  ;;  %v3867_v15 = vpack.c.bf16 %v1204_v14, %v1203_v13  ;;  %v1489_v9 = vld [vmem:[#allocation7 + $0x70] sm:$0xff]  ;;  %v1475_v13 = vld [vmem:[#allocation5 + $0x48] sm:$0xff] }
 0x286   : > { %3864 = vmatprep.subr.bf16.mxu0 %v3863_v12  ;;  %v3899_v11 = vpack.c.bf16 %v1490_v10, %v1489_v9  ;;  %v2159_v9 = vld [vmem:[#allocation8 + $0x50] sm:$0xff]  ;;  %v2160_v10 = vld [vmem:[#allocation8 + $0x58] sm:$0xff] }
 0x289   : > { %3866 = vmatpush3.bf16.msra.mxu0 %v3863_v12  ;;  %v1474_v12 = vld [vmem:[#allocation5 + $0x40] sm:$0xff] }
 0x28a   : > { %3868 = vmatprep.subr.bf16.mxu0 %v3867_v15  ;;  %v3903_v14 = vpack.c.bf16 %v1475_v13, %v1474_v12  ;;  %v2161_v12 = vld [vmem:[#allocation8 + $0x60] sm:$0xff]  ;;  %v2162_v13 = vld [vmem:[#allocation8 + $0x68] sm:$0xff] }
 0x28c   : > { %3529 = vmatmul.mubr.msk.f32.vlgmr.msra.gmra.mrb[4].mxu0 %vm543_vm1, %v4788_v18 }
 0x28d   : > { %3870 = vmatpush3.bf16.msra.mxu0 %v3867_v15  ;;  %v1476_v15 = vld [vmem:[#allocation5 + $0x50] sm:$0xff] }
 0x28e   : > { %3872 = vmatprep.subr.bf16.mxu0 %v3871_v19  ;;  %v3907_v17 = vpack.c.bf16 %v1477_v16, %v1476_v15  ;;  %v2163_v15 = vld [vmem:[#allocation8 + $0x70] sm:$0xff]  ;;  %v2164_v16 = vld [vmem:[#allocation8 + $0x78] sm:$0xff] }
 0x291   : > { %3874 = vmatpush3.bf16.msra.mxu0 %v3871_v19  ;;  %v1478_v19 = vld [vmem:[#allocation5 + $0x60] sm:$0xff] }
 0x292   : > { %3876 = vmatprep.subr.bf16.mxu0 %v3875_v22 }
 0x295   : > { %3878 = vmatpush3.bf16.msra.mxu0 %v3875_v22  ;;  %v1481_v22 = vld [vmem:[#allocation5 + $0x78] sm:$0xff] }
 0x296   : > { %3880 = vmatprep.subr.bf16.mxu0 %v3879_v28 }
 0x299   : > { %3882 = vmatpush3.bf16.msra.mxu0 %v3879_v28 }
 0x29a   : > { %3924 = vmatprep.subr.bf16.mxu0 %v3923_v31 }
 0x357   : > { %v1115_v23 = vpop.f32.mrb[4].mxu1 }
 0x358   : > { %v3506_v25 = vpop.f32.mrb[5].mxu1  ;;  %3507 = vmatprep.subr.mxu1 %v1115_v23 }
 0x359   : > { %3508 = vmatpush3.msra.mxu1 %v1115_v23  ;;  %v3915_v23 = vpack.c.bf16 %v1481_v22, %v1480_v21  ;;  %v2481_v21 = vld [vmem:[#allocation10] sm:$0xff]  ;;  %v2482_v22 = vld [vmem:[#allocation10 + $0x8] sm:$0xff] }
 0x35a   : > { %3510 = vmatmul.mubr.msk.f32.vlgmr.msra.gmra.mrb[0].mxu1 %vm617_vm2, %v3152_v24 }
 0x35b   : > { %3554 = vmatprep.mubr.msk.f32.mxu1 %vm1383_vm3, %v4818_v58 }
 0x42d   : > { %v3511_v33 = vpop.f32.mrb[0].mxu1 }
 0x42e   : > { %v1191_v36 = vpop.f32.mrb[1].mxu1  ;;  %v4801_v38 = vadd.f32 %v3511_v33, %v3140_v32  ;;  %v4854_v33 = vld [vmem:[%s4979_s5 + $0x20] sm:$0xff] }
 0x42f   : > { %v4799_v37 = vadd.f32 %v3140_v32, %v1191_v36  ;;  %v4849_v32 = vld [vmem:[%s4979_s5 + $0x18] sm:$0xff] }
 0x430   : > { %v1987_v36 = vld [vmem:[#allocation8 + $0x18] sm:$0xff] }
 0x431   : > { %3547 = vmatprep.mubr.msk.f32.mxu0 %vm543_vm1, %v4799_v37 }
 0x432   : > { %3548 = vmatmul.mubr.msk.f32.vlgmr.msra.gmra.mrb[4].mxu0 %vm543_vm1, %v4801_v38 }
 0x433   : > { %3926 = vmatpush3.bf16.msra.mxu0 %v3923_v31  ;;  %3618 = vmatprep.mubr.msk.f32.mxu0 %vm543_vm1, %v4784_v8  ;;  %v1985_v31 = vld [vmem:[#allocation8 + $0x8] sm:$0xff] }
 0x434   : > { %3928 = vmatprep.subr.bf16.mxu0 %v3927_v39  ;;  %v3959_v34 = vpack.c.bf16 %v1985_v31, %v1984_v30 }
 0x437   : > { %3930 = vmatpush3.bf16.msra.mxu0 %v3927_v39  ;;  %v1988_v39 = vld [vmem:[#allocation8 + $0x20] sm:$0xff] }
 0x438   : > { %3932 = vmatprep.subr.bf16.mxu0 %v3931_v42  ;;  %v3967_v41 = vpack.c.bf16 %v1989_v40, %v1988_v39  ;;  %v2815_v39 = vld [vmem:[#allocation10 + $0x80] sm:$0xff]  ;;  %v2816_v40 = vld [vmem:[#allocation10 + $0x88] sm:$0xff] }
 0x43b   : > { %3934 = vmatpush3.bf16.msra.mxu0 %v3931_v42  ;;  %v1990_v42 = vld [vmem:[#allocation8 + $0x30] sm:$0xff] }
 0x43c   : > { %3936 = vmatprep.subr.bf16.mxu0 %v3935_v45  ;;  %v3971_v44 = vpack.c.bf16 %v1991_v43, %v1990_v42  ;;  %v3183_v42 = vld [vmem:[%s4984_s10] ss:$0 sm:$0xff] }
 0x43f   : > { %3938 = vmatpush3.bf16.msra.mxu0 %v3935_v45  ;;  %v2318_v45 = vld [vmem:[#allocation8 + $0x80] sm:$0xff] }
 0x440   : > { %3940 = vmatprep.subr.bf16.mxu0 %v3939_v48  ;;  %v3999_v47 = vpack.c.bf16 %v2319_v46, %v2318_v45 }
 0x442   : > { %3619 = vmatmul.mubr.msk.f32.vlgmr.msra.gmra.mrb[6].mxu0 %vm543_vm1, %v4788_v18 }
 0x443   : > { %3942 = vmatpush3.bf16.msra.mxu0 %v3939_v48  ;;  %3637 = vmatprep.mubr.msk.f32.mxu0 %vm543_vm1, %v4799_v37  ;;  %v3162_v48 = vld [vmem:[%s4982_s8] ss:$0 sm:$0xff] }
 0x444   : > { %3944 = vmatprep.subr.bf16.mxu0 %v3943_v51 }
 0x447   : > { %3946 = vmatpush3.bf16.msra.mxu0 %v3943_v51 }
 0x448   : > { %3948 = vmatprep.subr.bf16.mxu0 %v3947_v54 }
 0x44b   : > { %3950 = vmatpush3.bf16.msra.mxu0 %v3947_v54  ;;  %v2321_v54 = vld [vmem:[#allocation8 + $0x98] sm:$0xff] }
 0x44c   : > { %3952 = vmatprep.subr.bf16.mxu0 %v3951_v57 }
 0x44f   : > { %3954 = vmatpush3.bf16.msra.mxu0 %v3951_v57  ;;  %v4003_v57 = vpack.c.bf16 %v2321_v54, %v2320_v53  ;;  %v2821_v54 = vld [vmem:[#allocation10 + $0xb0] sm:$0xff] }
 0x452   : > { %3638 = vmatmul.mubr.msk.f32.vlgmr.msra.gmra.mrb[6].mxu0 %vm543_vm1, %v4801_v38 }
 0x453   : > { %3670 = vmatprep.mubr.msk.f32.mxu0 %vm1383_vm3, %v4818_v58 }
 0x505   : > { %v3549_v61 = vpop.f32.mrb[4].mxu0 }
 0x506   : > { %v1372_v62 = vpop.f32.mrb[5].mxu0 }
 0x507   : > { %v3883_v63 = vpack.c.bf16 %v3549_v61, %v1372_v62  ;;  %v4007_v61 = vpack.c.bf16 %v2323_v60, %v2322_v59  ;;  %v2324_v62 = vld [vmem:[#allocation8 + $0xb0] sm:$0xff]  ;;  %v2654_v60 = vld [vmem:[#allocation10 + $0x40] sm:$0xff] }
 0x509   : > { %3884 = vmatprep.subr.bf16.mxu1 %v3883_v63 }
 0x50a   : > { %3886 = vmatpush3.bf16.msra.mxu1 %v3883_v63  ;;  %v2325_v63 = vld [vmem:[#allocation8 + $0xb8] sm:$0xff] }
 0x50b   : > { %3888 = vmatprep.subr.bf16.mxu1 %v3887_v1 }
 0x50d   : > { %3555 = vmatmul.mubr.msk.f32.vlgmr.msra.gmra.mrb[6].mxu1 %vm1383_vm3, %v4827_v4 }
 0x50e   : > { %3890 = vmatpush3.bf16.msra.mxu1 %v3887_v1  ;;  %3573 = vmatprep.mubr.msk.f32.mxu1 %vm543_vm1, %v4784_v8  ;;  %v3911_v8 = vpack.c.bf16 %v1479_v20, %v1478_v19  ;;  %v4011_v1 = vpack.c.bf16 %v2325_v63, %v2324_v62 }
 0x50f   : > { %3892 = vmatprep.subr.bf16.mxu1 %v3891_v5 }
 0x512   : > { %3894 = vmatpush3.bf16.msra.mxu1 %v3891_v5 }
 0x513   : > { %3896 = vmatprep.subr.bf16.mxu1 %v3895_v7 }
 0x516   : > { %3898 = vmatpush3.bf16.msra.mxu1 %v3895_v7  ;;  %v3979_v7 = vpack.c.bf16 %v2158_v3, %v2157_v2  ;;  %v2656_v3 = vld [vmem:[#allocation10 + $0x50] sm:$0xff] }
 0x517   : > { %3900 = vmatprep.subr.bf16.mxu1 %v3899_v11 }
 0x51a   : > { %3902 = vmatpush3.bf16.msra.mxu1 %v3899_v11  ;;  %v3983_v11 = vpack.c.bf16 %v2160_v10, %v2159_v9  ;;  %v2660_v10 = vld [vmem:[#allocation10 + $0x70] sm:$0xff] }
 0x51b   : > { %3904 = vmatprep.subr.bf16.mxu1 %v3903_v14 }
 0x51d   : > { %3574 = vmatmul.mubr.msk.f32.vlgmr.msra.gmra.mrb[8].mxu1 %vm543_vm1, %v4788_v18  ;;  %v4842_v18 = vld [vmem:[%s4979_s5 + $0x10] sm:$0xff] }
 0x51e   : > { %3906 = vmatpush3.bf16.msra.mxu1 %v3903_v14  ;;  %3592 = vmatprep.mubr.msk.f32.mxu1 %vm543_vm1, %v4799_v37  ;;  %v4863_v37 = vld [vmem:[%s4979_s5 + $0x28] sm:$0xff]  ;;  %v3987_v14 = vpack.c.bf16 %v2162_v13, %v2161_v12 }
 0x51f   : > { %3908 = vmatprep.subr.bf16.mxu1 %v3907_v17 }
 0x522   : > { %3910 = vmatpush3.bf16.msra.mxu1 %v3907_v17  ;;  %v3991_v17 = vpack.c.bf16 %v2164_v16, %v2163_v15 }
 0x523   : > { %3912 = vmatprep.subr.bf16.mxu1 %v3911_v8 }
 0x525   : > { %v3639_v24 = vpop.f32.mrb[6].mxu0 }
 0x526   : > { %v1886_v25 = vpop.f32.mrb[7].mxu0  ;;  %3914 = vmatpush3.bf16.msra.mxu1 %v3911_v8 }
 0x527   : > { %v3955_v26 = vpack.c.bf16 %v3639_v24, %v1886_v25  ;;  %3916 = vmatprep.subr.bf16.mxu1 %v3915_v23  ;;  %v4019_v24 = vpack.c.bf16 %v2482_v22, %v2481_v21  ;;  %v2484_v25 = vld [vmem:[#allocation10 + $0x18] sm:$0xff] }
 0x52a   : > { %3918 = vmatpush3.bf16.msra.mxu1 %v3915_v23  ;;  %v2483_v23 = vld [vmem:[#allocation10 + $0x10] sm:$0xff] }
 0x52d   : > { %3593 = vmatmul.mubr.msk.f32.vlgmr.msra.gmra.mrb[8].mxu1 %vm543_vm1, %v4801_v38  ;;  %v3963_v38 = vpack.c.bf16 %v1987_v36, %v1986_v35  ;;  %v2487_v35 = vld [vmem:[#allocation10 + $0x30] sm:$0xff]  ;;  %v2488_v36 = vld [vmem:[#allocation10 + $0x38] sm:$0xff] }
 0x52e   : > { %3599 = vmatprep.mubr.msk.f32.mxu1 %vm1383_vm3, %v4842_v18 }
 0x600   : > { %v3594_v27 = vpop.f32.mrb[8].mxu1 }
 0x601   : > { %v1632_v28 = vpop.f32.mrb[9].mxu1 }
 0x602   : > { %v3919_v29 = vpack.c.bf16 %v3594_v27, %v1632_v28  ;;  %v2485_v27 = vld [vmem:[#allocation10 + $0x20] sm:$0xff]  ;;  %v2486_v28 = vld [vmem:[#allocation10 + $0x28] sm:$0xff] }
 0x604   : > { %3920 = vmatprep.subr.bf16.mxu1 %v3919_v29 }
 0x605   : > { %3922 = vmatpush3.bf16.msra.mxu1 %v3919_v29  ;;  %v4027_v29 = vpack.c.bf16 %v2486_v28, %v2485_v27 }
 0x606   : > { %3956 = vmatprep.subr.bf16.mxu1 %v3955_v26 }
 0x608   : > { %3600 = vmatmul.mubr.msk.f32.vlgmr.msra.gmra.mrb[6].mxu1 %vm1383_vm3, %v4849_v32 }
 0x609   : > { %3958 = vmatpush3.bf16.msra.mxu1 %v3955_v26  ;;  %3644 = vmatprep.mubr.msk.f32.mxu1 %vm1383_vm3, %v4854_v33  ;;  %v4023_v26 = vpack.c.bf16 %v2484_v25, %v2483_v23 }
 0x60a   : > { %3960 = vmatprep.subr.bf16.mxu1 %v3959_v34 }
 0x610   : > { %3645 = vmatmul.mubr.msk.f32.vlgmr.msra.gmra.mrb[6].mxu1 %vm1383_vm3, %v4863_v37 }
 0x611   : > { %3962 = vmatpush3.bf16.msra.mxu1 %v3959_v34 }
 0x612   : > { %3964 = vmatprep.subr.bf16.mxu1 %v3963_v38 }
 0x615   : > { %3966 = vmatpush3.bf16.msra.mxu1 %v3963_v38  ;;  %v4031_v38 = vpack.c.bf16 %v2488_v36, %v2487_v35 }
 0x616   : > { %3968 = vmatprep.subr.bf16.mxu1 %v3967_v41 }
 0x619   : > { %3970 = vmatpush3.bf16.msra.mxu1 %v3967_v41  ;;  %v4059_v41 = vpack.c.bf16 %v2816_v40, %v2815_v39 }
 0x61a   : > { %3972 = vmatprep.subr.bf16.mxu1 %v3971_v44 }
 0x61d   : > { %3974 = vmatpush3.bf16.msra.mxu1 %v3971_v44 }
 0x61e   : > { %4000 = vmatprep.subr.bf16.mxu1 %v3999_v47 }
 0x6e3   : > { %v3646_v49 = vpop.f32.mrb[6].mxu1 }
 0x6e4   : > { %v4081_v50 = vadd.f32 %v3646_v49, %v3162_v48  ;;  %v1970_v51 = vpop.f32.mrb[7].mxu1 }
 0x6e5   : > { %v4082_v52 = vadd.f32 %v3162_v48, %v1970_v51  ;;  %v2818_v48 = vld [vmem:[#allocation10 + $0x98] sm:$0xff]  ;;  %v2819_v51 = vld [vmem:[#allocation10 + $0xa0] sm:$0xff] }
 0x6e6   : > { %v4872_v56 = vmax.f32 %v4081_v50, 0.0 }
 0x6e7   : > { %v4870_v55 = vmax.f32 %v4082_v52, 0.0  ;;  %v2820_v52 = vld [vmem:[#allocation10 + $0xa8] sm:$0xff] }
 0x6e8   : > { %v4067_v53 = vpack.c.bf16 %v2820_v52, %v2819_v51 }
 0x6e9   : > { %3663 = vmatprep.mubr.msk.f32.mxu1 %vm543_vm1, %v4870_v55 }
 0x6ea   : > { %3664 = vmatmul.mubr.msk.f32.vlgmr.msra.gmra.mrb[10].mxu1 %vm543_vm1, %v4872_v56 }
 0x6eb   : > { %4002 = vmatpush3.bf16.msra.mxu1 %v3999_v47  ;;  %3715 = vmatprep.mubr.msk.f32.mxu1 %vm543_vm1, %v4870_v55  ;;  %v2817_v47 = vld [vmem:[#allocation10 + $0x90] sm:$0xff] }
 0x6ec   : > { %4004 = vmatprep.subr.bf16.mxu1 %v4003_v57  ;;  %v4063_v50 = vpack.c.bf16 %v2818_v48, %v2817_v47 }
 0x6ef   : > { %4006 = vmatpush3.bf16.msra.mxu1 %v4003_v57  ;;  %v2822_v57 = vld [vmem:[#allocation10 + $0xb8] sm:$0xff] }
 0x6f0   : > { %4008 = vmatprep.subr.bf16.mxu1 %v4007_v61  ;;  %v4071_v59 = vpack.c.bf16 %v2822_v57, %v2821_v54 }
 0x6f3   : > { %4010 = vmatpush3.bf16.msra.mxu1 %v4007_v61  ;;  %v2655_v61 = vld [vmem:[#allocation10 + $0x48] sm:$0xff] }
 0x6f4   : > { %4012 = vmatprep.subr.bf16.mxu1 %v4011_v1  ;;  %v4039_v2 = vpack.c.bf16 %v2655_v61, %v2654_v60 }
 0x6f7   : > { %4014 = vmatpush3.bf16.msra.mxu1 %v4011_v1 }
 0x6f8   : > { %4020 = vmatprep.subr.bf16.mxu1 %v4019_v24 }
 0x6fa   : > { %3716 = vmatmul.mubr.msk.f32.vlgmr.msra.gmra.mrb[12].mxu1 %vm543_vm1, %v4872_v56 }
 0x6fb   : > { %4022 = vmatpush3.bf16.msra.mxu1 %v4019_v24 }
 0x6fc   : > { %4024 = vmatprep.subr.bf16.mxu1 %v4023_v26 }
 0x6ff   : > { %4026 = vmatpush3.bf16.msra.mxu1 %v4023_v26 }
 0x700   : > { %4028 = vmatprep.subr.bf16.mxu1 %v4027_v29 }
 0x703   : > { %4030 = vmatpush3.bf16.msra.mxu1 %v4027_v29 }
 0x704   : > { %4032 = vmatprep.subr.bf16.mxu1 %v4031_v38 }
 0x707   : > { %4034 = vmatpush3.bf16.msra.mxu1 %v4031_v38 }
 0x708   : > { %4060 = vmatprep.subr.bf16.mxu1 %v4059_v41 }
 0x7bd   : > { %v3665_v5 = vpop.f32.mrb[10].mxu1 }
 0x7be   : > { %v2064_v0 = vpop.f32.mrb[11].mxu1 }
 0x7bf   : > { %v3975_v6 = vpack.c.bf16 %v3665_v5, %v2064_v0  ;;  %v2657_v5 = vld [vmem:[#allocation10 + $0x58] sm:$0xff] }
 0x7c0   : > { %v4043_v0 = vpack.c.bf16 %v2657_v5, %v2656_v3 }
 0x7c1   : > { %3976 = vmatprep.subr.bf16.mxu0 %v3975_v6 }
 0x7c2   : > { %3978 = vmatpush3.bf16.msra.mxu0 %v3975_v6  ;;  %v2658_v6 = vld [vmem:[#allocation10 + $0x60] sm:$0xff] }
 0x7c3   : > { %3980 = vmatprep.subr.bf16.mxu0 %v3979_v7 }
 0x7c5   : > { %3671 = vmatmul.mubr.msk.f32.vlgmr.msra.gmra.mrb[8].mxu0 %vm1383_vm3, %v4827_v4 }
 0x7c6   : > { %3982 = vmatpush3.bf16.msra.mxu0 %v3979_v7  ;;  %3689 = vmatprep.mubr.msk.f32.mxu0 %vm543_vm1, %v4870_v55  ;;  %v2659_v7 = vld [vmem:[#allocation10 + $0x68] sm:$0xff] }
 0x7c7   : > { %3984 = vmatprep.subr.bf16.mxu0 %v3983_v11  ;;  %v4047_v9 = vpack.c.bf16 %v2659_v7, %v2658_v6 }
 0x7ca   : > { %3986 = vmatpush3.bf16.msra.mxu0 %v3983_v11  ;;  %v2661_v11 = vld [vmem:[#allocation10 + $0x78] sm:$0xff] }
 0x7cb   : > { %3988 = vmatprep.subr.bf16.mxu0 %v3987_v14  ;;  %v4051_v12 = vpack.c.bf16 %v2661_v11, %v2660_v10 }
 0x7cd   : > { %v3717_v19 = vpop.f32.mrb[12].mxu1 }
 0x7ce   : > { %v2392_v20 = vpop.f32.mrb[13].mxu1  ;;  %3990 = vmatpush3.bf16.msra.mxu0 %v3987_v14 }
 0x7cf   : > { %v4015_v8 = vpack.c.bf16 %v3717_v19, %v2392_v20  ;;  %3992 = vmatprep.subr.bf16.mxu0 %v3991_v17 }
 0x7d2   : > { %3994 = vmatpush3.bf16.msra.mxu0 %v3991_v17 }
 0x7d5   : > { %3690 = vmatmul.mubr.msk.f32.vlgmr.msra.gmra.mrb[10].mxu0 %vm543_vm1, %v4872_v56 }
 0x7d6   : > { %3696 = vmatprep.mubr.msk.f32.mxu0 %vm1383_vm3, %v4842_v18 }
 0x8a8   : > { %v3691_v30 = vpop.f32.mrb[10].mxu0 }
 0x8a9   : > { %v2231_v31 = vpop.f32.mrb[11].mxu0 }
 0x8aa   : > { %v3995_v34 = vpack.c.bf16 %v3691_v30, %v2231_v31 }
 0x8ac   : > { %3996 = vmatprep.subr.bf16.mxu0 %v3995_v34 }
 0x8ad   : > { %3998 = vmatpush3.bf16.msra.mxu0 %v3995_v34 }
 0x8ae   : > { %4016 = vmatprep.subr.bf16.mxu0 %v4015_v8 }
 0x8b0   : > { %3697 = vmatmul.mubr.msk.f32.vlgmr.msra.gmra.mrb[8].mxu0 %vm1383_vm3, %v4849_v32 }
 0x8b1   : > { %4018 = vmatpush3.bf16.msra.mxu0 %v4015_v8  ;;  %3722 = vmatprep.mubr.msk.f32.mxu0 %vm1383_vm3, %v4854_v33 }
 0x8b8   : > { %3723 = vmatmul.mubr.msk.f32.vlgmr.msra.gmra.mrb[8].mxu0 %vm1383_vm3, %v4863_v37 }
 0x8b9   : > { %3748 = vmatprep.mubr.msk.f32.mxu0 %vm1383_vm3, %v4818_v58 }
 0x98b   : > { %v3724_v43 = vpop.f32.mrb[8].mxu0 }
 0x98c   : > { %v4083_v44 = vadd.f32 %v3724_v43, %v3183_v42  ;;  %v2467_v45 = vpop.f32.mrb[9].mxu0 }
 0x98d   : > { %v4084_v46 = vadd.f32 %v3183_v42, %v2467_v45 }
 0x98e   : > { %v2479_v49 = vmax.f32 %v4083_v44, 0.0 }
 0x98f   : > { %v2478_v58 = vmax.f32 %v4084_v46, 0.0 }
 0x991   : > { %3741 = vmatprep.mubr.msk.f32.mxu1 %vm543_vm1, %v2478_v58 }
 0x992   : > { %3742 = vmatmul.mubr.msk.f32.vlgmr.msra.gmra.mrb[14].mxu1 %vm543_vm1, %v2479_v49 }
 0x993   : > { %4062 = vmatpush3.bf16.msra.mxu1 %v4059_v41  ;;  %3793 = vmatprep.mubr.msk.f32.mxu1 %vm543_vm1, %v2478_v58 }
 0x994   : > { %4064 = vmatprep.subr.bf16.mxu1 %v4063_v50 }
 0x997   : > { %4066 = vmatpush3.bf16.msra.mxu1 %v4063_v50 }
 0x998   : > { %4068 = vmatprep.subr.bf16.mxu1 %v4067_v53 }
 0x99b   : > { %4070 = vmatpush3.bf16.msra.mxu1 %v4067_v53 }
 0x99c   : > { %4072 = vmatprep.subr.bf16.mxu1 %v4071_v59 }
 0x99f   : > { %4074 = vmatpush3.bf16.msra.mxu1 %v4071_v59 }
 0x9a2   : > { %3794 = vmatmul.mubr.msk.f32.vlgmr.msra.gmra.mrb[16].mxu1 %vm543_vm1, %v2479_v49 }
 0xa65   : > { %v3743_v62 = vpop.f32.mrb[14].mxu1 }
 0xa66   : > { %v2561_v63 = vpop.f32.mrb[15].mxu1 }
 0xa67   : > { %v4035_v1 = vpack.c.bf16 %v3743_v62, %v2561_v63 }
 0xa69   : > { %4036 = vmatprep.subr.bf16.mxu0 %v4035_v1 }
 0xa6a   : > { %4038 = vmatpush3.bf16.msra.mxu0 %v4035_v1 }
 0xa6b   : > { %4040 = vmatprep.subr.bf16.mxu0 %v4039_v2 }
 0xa6d   : > { %3749 = vmatmul.mubr.msk.f32.vlgmr.msra.gmra.mrb[12].mxu0 %vm1383_vm3, %v4827_v4 }
 0xa6e   : > { %4042 = vmatpush3.bf16.msra.mxu0 %v4039_v2  ;;  %3767 = vmatprep.mubr.msk.f32.mxu0 %vm543_vm1, %v2478_v58 }
 0xa6f   : > { %4044 = vmatprep.subr.bf16.mxu0 %v4043_v0 }
 0xa72   : > { %4046 = vmatpush3.bf16.msra.mxu0 %v4043_v0 }
 0xa73   : > { %4048 = vmatprep.subr.bf16.mxu0 %v4047_v9 }
 0xa75   : > { %v3795_v13 = vpop.f32.mrb[16].mxu1 }
 0xa76   : > { %v2889_v14 = vpop.f32.mrb[17].mxu1  ;;  %4050 = vmatpush3.bf16.msra.mxu0 %v4047_v9 }
 0xa77   : > { %v4075_v15 = vpack.c.bf16 %v3795_v13, %v2889_v14  ;;  %4052 = vmatprep.subr.bf16.mxu0 %v4051_v12 }
 0xa7a   : > { %4054 = vmatpush3.bf16.msra.mxu0 %v4051_v12 }
 0xa7d   : > { %3768 = vmatmul.mubr.msk.f32.vlgmr.msra.gmra.mrb[14].mxu0 %vm543_vm1, %v2479_v49 }
 0xa7e   : > { %3774 = vmatprep.mubr.msk.f32.mxu0 %vm1383_vm3, %v4842_v18  ;;  %v3196_v18 = vld [vmem:[%s5023_s24] ss:$0 sm:$0xff] }
 0xb50   : > { %v3769_v4 = vpop.f32.mrb[14].mxu0 }
 0xb51   : > { %v2728_v16 = vpop.f32.mrb[15].mxu0 }
 0xb52   : > { %v4055_v17 = vpack.c.bf16 %v3769_v4, %v2728_v16 }
 0xb54   : > { %4056 = vmatprep.subr.bf16.mxu0 %v4055_v17 }
 0xb55   : > { %4058 = vmatpush3.bf16.msra.mxu0 %v4055_v17 }
 0xb56   : > { %4076 = vmatprep.subr.bf16.mxu0 %v4075_v15 }
 0xb58   : > { %3775 = vmatmul.mubr.msk.f32.vlgmr.msra.gmra.mrb[12].mxu0 %vm1383_vm3, %v4849_v32 }
 0xb59   : > { %4078 = vmatpush3.bf16.msra.mxu0 %v4075_v15  ;;  %3800 = vmatprep.mubr.msk.f32.mxu0 %vm1383_vm3, %v4854_v33 }
 0xb60   : > { %3801 = vmatmul.mubr.msk.f32.vlgmr.msra.gmra.mrb[12].mxu0 %vm1383_vm3, %v4863_v37 }
 0xc33   : > { %v3802_v19 = vpop.f32.mrb[12].mxu0 }
 0xc34   : > { %v4085_v20 = vadd.f32 %v3802_v19, %v3196_v18  ;;  %v2964_v8 = vpop.f32.mrb[13].mxu0 }
 0xc35   : > { %v4086_v21 = vadd.f32 %v3196_v18, %v2964_v8 }
 0xc36   : > { %v2976_v32 = vmax.f32 %v4085_v20, 0.0 }
 0xc37   : > { %v2975_v22 = vmax.f32 %v4086_v21, 0.0 }
 0xc38   : > { %v2978_v33 = vadd.f32 %v2976_v32, %v4872_v56 }
 0xc39   : > { %v2977_v37 = vadd.f32 %v2975_v22, %v4870_v55 }
 0xc3a   : > { %2980 = vst.msk [vmem:[%s519_s22 + $0x8] sm:$0xff] %vm543_vm1, %v2978_v33 }
 0xc3b   : > { %2979 = vst.msk [vmem:[%s519_s22] sm:$0xff] %vm543_vm1, %v2977_v37 }
 0xc3c   : > { %4361 = shalt.err (!%p4358_p0)
}
 0xc3d   : > { %s4362_s6 = scalar_lea.hbm %s4926_s23, 256  ;;  %s4366_s18 = scalar_lea.hbm %s5025_s20, 512 }
 0xc3e   : > { %p4363_p10 = scmp.ne.s32.totalorder %s4926_s23, %s4362_s6  ;;  %p4367_p4 = scmp.lt.u32.totalorder %s4926_s23, %s5025_s20 }
 0xc3f   : > { %p4368_p12 = scmp.lt.u32.totalorder %s4366_s18, %s4362_s6  ;;  %p4370_p8 = scmp.lt.u32.totalorder %s4362_s6, %s4926_s23 }
 0xc40   : > { %p4364_p2 = pnand %p4363_p10, %p5026_p11 }
 0xc41   : > { %p4369_p7 = por %p4368_p12, %p4367_p4 }
 0xc42   : > { %p4365_p3 = pneg %p4364_p2 }
 0xc43   : > { %p4371_p13 = por %p4370_p8, %p4369_p7 }
 0xc45   : > { %p4372_p1 = pnand %p4371_p13, %p4365_p3 }
 0xc47   : > { %4375 = shalt.err (!%p4372_p1)
}
 0xc48   : > { %s4435_s27 = smov 128   ;;  %s4436_s22 = smov 8  }
 0xc49   : > { %4131 = dma.vmem_to_hbm [thread:$0]  (%p5026_p11), %s4928_s30, 256, %s4926_s23, %s4933_s29, %s4435_s27, %s4435_s27, %s4436_s22  }
 0xc4a PF: > { %s5027_s28 = sld [smem:[#allocation18_spill]]  ;;  %s5028_s16 = sld [smem:[#allocation16_spill]] }
 0xc4b   : > { %s5029_s17 = sld [smem:[#allocation22_spill]] }
 0xc50   : > { %p4163_p6 = scmp.ge.s32.totalorder %s5027_s28, 2  ;;  %s3010_s14 = sand.u32 1, %s5028_s16  }
 0xc51   : > { %p5030_p9 = scmp.ne.s32.totalorder %s5029_s17, 0  ;;  %s3011_s19 = scalar_lea.sflag [#allocation4], %s3010_s14 }
 0xc53   : > { %p4150_p5 = pnand %p4163_p6, %p5030_p9 }
 0xc55   : > { %4405 = dma.done.wait (!%p4150_p5), %s3011_s19, 256  }
 0xc56   : > { %4407 = vsyncadd (!%p4150_p5), %s3011_s19, 4294967040  ;;  %s5031_s28 = sld [smem:[#allocation19_spill]]  ;;  %s5032_s6 = sld [smem:[#allocation17_spill]] }
 0xc57   : > { %s5033_s27 = sld [smem:[#allocation20_spill]]  ;;  %s5034_s25 = smov %s4414_s26 }
 0xc5c   : > { %p26_p0 = scmp.ge.s32.totalorder %s5031_s28, 4   ;;  %s5035_s26 = smov %s5032_s6 }
 0xc5e   :  { %28 = sbr.rel (!%p26_p0) target bundleno = 10 (0xa), region = 147 }
 0xc65   :  { %3016 = vsyncpa [#allocation3], 1 }
 0xc66   :  { %3018 = vsyncpa [#allocation3 + $0x1], 1 }
 0xc67   :  { %3019 = vsyncpa [#allocation6], 1 }
 0xc68   :  { %3020 = vsyncpa [#allocation9], 1 }
 0xc69   :  { %3021 = vsyncpa [#allocation4], 1 }
 0xc6a   :  { %3023 = vsyncpa [#allocation4 + $0x1], 1 }

</bundles_post_ra>
